<compile_context>
chip_gen: v5e
topology: v5e:2x2
jax: 0.10.0
libtpu: 0.0.40
codegen_flags: <defaults>
</compile_context>

<pallas_src>
import functools

import jax
import jax.numpy as jnp
from jax.experimental import pallas as pl
from jax.experimental.pallas import tpu as pltpu

# --------------------------------------------------------------------------
# Small compatibility shims.
# --------------------------------------------------------------------------
_CompilerParams = getattr(pltpu, "CompilerParams", None) or getattr(
    pltpu, "TPUCompilerParams", None)

# Scoped-VMEM budget: above the v5e (16 MiB) / v6e (32 MiB) defaults, below
# the v7x 64 MiB physical ceiling.  Re-derive when changing tile targets.
_VMEM_LIMIT_BYTES = 48 * 1024 * 1024


def _mosaic_params(dimension_semantics):
    if _CompilerParams is None:
        return None
    try:
        return _CompilerParams(dimension_semantics=dimension_semantics,
                               vmem_limit_bytes=_VMEM_LIMIT_BYTES)
    except TypeError:  # very old jax without vmem_limit_bytes
        return _CompilerParams(dimension_semantics=dimension_semantics)


if hasattr(pl, "reciprocal"):
    def _recip(x):
        return pl.reciprocal(x, approx=True)
else:  # very old jax
    def _recip(x):
        return 1.0 / x


def _round_up(x, m):
    return ((x + m - 1) // m) * m


def _fit_block(dim, target, align):
    """Largest multiple of `align` <= target that divides `dim`, else full dim."""
    b = min(target, dim)
    b = (b // align) * align
    while b >= align and dim % b:
        b -= align
    if b >= align and dim % b == 0:
        return b
    return dim  # full-dim block is always legal


def _gelu_tanh(x):
    # matches torch.nn.functional.gelu(..., approximate='tanh')
    c = 0.7978845608028654  # sqrt(2/pi)
    return 0.5 * x * (1.0 + jnp.tanh(c * (x + 0.044715 * x * x * x)))


# --------------------------------------------------------------------------
# Kernel 1: patch-embed GEMM, full-K block, fused (+pos_embed +conv_bias).
# --------------------------------------------------------------------------
def _patch_embed_kernel(x_ref, w_ref, pos_ref, b_ref, o_ref):
    y = jnp.dot(x_ref[...], w_ref[...], preferred_element_type=jnp.float32)
    y = y + pos_ref[...].astype(jnp.float32) + b_ref[...].astype(jnp.float32)
    o_ref[...] = y.astype(o_ref.dtype)


def patch_embed_gemm(x, w, pos, bias, *, bm=256, bn=256,
                     out_dtype=jnp.bfloat16):
    """[M, K] @ [K, D] with position-embedding + conv-bias epilogue.

    K = C*P*P (padded to a 128 multiple) is small, so the K block is the full
    reduction (no K grid axis, no accumulator scratch, MXU fully fed).  `pos`
    is indexed with a modulo index_map so the (M, D) broadcast is never
    materialized in HBM.
    """
    M, K = x.shape
    K2, D = w.shape
    N = pos.shape[0]
    assert K == K2 and pos.shape == (N, D) and M % N == 0
    bm = _fit_block(N, bm, 8)            # bm | N  =>  bm | M
    bn = _fit_block(D, bn, 128)
    n_pos_blocks = N // bm
    grid = (M // bm, D // bn)
    return pl.pallas_call(
        _patch_embed_kernel,
        out_shape=jax.ShapeDtypeStruct((M, D), out_dtype),
        grid=grid,
        in_specs=[
            pl.BlockSpec((bm, K), lambda i, j: (i, 0)),
            pl.BlockSpec((K, bn), lambda i, j: (0, j)),
            pl.BlockSpec((bm, bn), lambda i, j: (i % n_pos_blocks, j)),
            pl.BlockSpec((1, bn), lambda i, j: (0, j)),
        ],
        out_specs=pl.BlockSpec((bm, bn), lambda i, j: (i, j)),
        compiler_params=_mosaic_params(("parallel", "parallel")),
    )(x, w, pos, bias.reshape(1, D))


# --------------------------------------------------------------------------
# Kernel 2: one-sweep [LN prologue] + GEMM + bias [+GELU] [+residual] [+LN].
#   1-D grid over M; the full [K, N] weight has a constant index_map so it is
#   DMA'd once and stays VMEM-resident; activations are read exactly once.
# --------------------------------------------------------------------------
def _make_ln_gemm_kernel(*, do_ln, do_gelu, do_res, do_out_ln, eps):
    def kernel(*refs):
        it = iter(refs)
        x_ref = next(it)
        if do_ln:
            g_ref = next(it)
            bln_ref = next(it)
        w_ref = next(it)
        bias_ref = next(it)
        if do_res:
            res_ref = next(it)
        if do_out_ln:
            g2_ref = next(it)
            b2_ref = next(it)
        o_ref = next(it)

        if do_ln:
            x = x_ref[...].astype(jnp.float32)
            mu = jnp.mean(x, axis=-1, keepdims=True)
            xc = x - mu
            var = jnp.mean(xc * xc, axis=-1, keepdims=True)
            x = xc * jax.lax.rsqrt(var + eps)
            x = (x * g_ref[...].astype(jnp.float32)
                 + bln_ref[...].astype(jnp.float32))
            x_mm = x.astype(w_ref.dtype)
        else:
            x_mm = x_ref[...]

        y = jnp.dot(x_mm, w_ref[...], preferred_element_type=jnp.float32)
        y = y + bias_ref[...].astype(jnp.float32)
        if do_gelu:
            y = _gelu_tanh(y)
        if do_res:
            y = y + res_ref[...].astype(jnp.float32)
        if do_out_ln:
            mu = jnp.mean(y, axis=-1, keepdims=True)
            yc = y - mu
            var = jnp.mean(yc * yc, axis=-1, keepdims=True)
            y = yc * jax.lax.rsqrt(var + eps)
            y = (y * g2_ref[...].astype(jnp.float32)
                 + b2_ref[...].astype(jnp.float32))
        o_ref[...] = y.astype(o_ref.dtype)

    return kernel


def fused_ln_gemm(x, w, bias, *, gamma=None, beta=None, residual=None,
                  gelu=False, out_ln=None, eps=1e-6, bm=256,
                  out_dtype=jnp.bfloat16):
    M, K = x.shape
    K2, N = w.shape
    assert K == K2
    bm = _fit_block(M, bm, 8)
    do_ln = gamma is not None
    do_res = residual is not None
    do_out_ln = out_ln is not None

    grid = (M // bm,)
    in_specs = [pl.BlockSpec((bm, K), lambda i: (i, 0))]
    args = [x]
    if do_ln:
        in_specs += [pl.BlockSpec((1, K), lambda i: (0, 0)),
                     pl.BlockSpec((1, K), lambda i: (0, 0))]
        args += [gamma.reshape(1, K), beta.reshape(1, K)]
    # Full-N weight block; constant index_map => resident across the M sweep.
    # TODO(synk): on v7x (64 MiB VMEM) request pipeline_mode=pl.Buffered(1)
    # for this block to halve its footprint.
    in_specs += [pl.BlockSpec((K, N), lambda i: (0, 0)),
                 pl.BlockSpec((1, N), lambda i: (0, 0))]
    args += [w, bias.reshape(1, N)]
    if do_res:
        in_specs += [pl.BlockSpec((bm, N), lambda i: (i, 0))]
        args += [residual]
    if do_out_ln:
        g2, b2 = out_ln
        in_specs += [pl.BlockSpec((1, N), lambda i: (0, 0)),
                     pl.BlockSpec((1, N), lambda i: (0, 0))]
        args += [g2.reshape(1, N), b2.reshape(1, N)]

    kernel = _make_ln_gemm_kernel(do_ln=do_ln, do_gelu=gelu, do_res=do_res,
                                  do_out_ln=do_out_ln, eps=eps)
    return pl.pallas_call(
        kernel,
        out_shape=jax.ShapeDtypeStruct((M, N), out_dtype),
        grid=grid,
        in_specs=in_specs,
        out_specs=pl.BlockSpec((bm, N), lambda i: (i, 0)),
        compiler_params=_mosaic_params(("parallel",)),
    )(*args)


# --------------------------------------------------------------------------
# Kernel 3: multi-head attention straight from the fused QKV activation.
# --------------------------------------------------------------------------
def _mha_kernel(q_ref, k_ref, v_ref, o_ref, *, num_heads, head_dim, scale):
    # q_ref: (1, bq, D) = the q columns of this q-row tile.
    # k_ref / v_ref: (1, N, D) = the k / v columns of the full sequence.
    # Fold the softmax scale into q once (relieves VPU/EUP on the score tile).
    q = (q_ref[0].astype(jnp.float32) * scale).astype(jnp.bfloat16)
    k = k_ref[0]
    v = v_ref[0]
    outs = []
    for h in range(num_heads):
        lo, hi = h * head_dim, (h + 1) * head_dim
        s = jax.lax.dot_general(q[:, lo:hi], k[:, lo:hi],
                                (((1,), (1,)), ((), ())),
                                preferred_element_type=jnp.float32)  # (bq, N)
        m = jnp.max(s, axis=-1, keepdims=True)
        p = jnp.exp(s - m)                                           # EUP
        denom = jnp.sum(p, axis=-1, keepdims=True)
        o_h = jnp.dot(p.astype(v.dtype), v[:, lo:hi],
                      preferred_element_type=jnp.float32)            # (bq, hd)
        outs.append(o_h * _recip(denom))
    # Single lane-dense store of the merged heads.
    o_ref[0] = jnp.concatenate(outs, axis=-1).astype(o_ref.dtype)


def multihead_attention(qkv, *, num_heads, head_dim, scale, bq=256,
                        out_dtype=jnp.bfloat16):
    """qkv: (B, N, 3D) with columns [q | k | v], head h at [h*hd, (h+1)*hd).

    No XLA head split/merge transposes: q/k/v ranges are selected via the
    last-dim BlockSpec, heads are peeled in-kernel, and the (B, N, D) output
    merges heads for free.  K/V blocks cover the full sequence (ViT N is
    small), so the softmax is one exact pass and K/V are DMA'd once per image.
    """
    B, N, threeD = qkv.shape
    D = num_heads * head_dim
    assert threeD == 3 * D
    bq = _fit_block(N, bq, 8)
    grid = (B, N // bq)
    kernel = functools.partial(_mha_kernel, num_heads=num_heads,
                               head_dim=head_dim, scale=scale)
    return pl.pallas_call(
        kernel,
        out_shape=jax.ShapeDtypeStruct((B, N, D), out_dtype),
        grid=grid,
        in_specs=[
            pl.BlockSpec((1, bq, D), lambda b, qi: (b, qi, 0)),
            pl.BlockSpec((1, N, D), lambda b, qi: (b, 0, 1)),
            pl.BlockSpec((1, N, D), lambda b, qi: (b, 0, 2)),
        ],
        out_specs=pl.BlockSpec((1, bq, D), lambda b, qi: (b, qi, 0)),
        compiler_params=_mosaic_params(("parallel", "parallel")),
    )(qkv, qkv, qkv)


# --------------------------------------------------------------------------
# Host-side layout glue (im2col unfold only).
# --------------------------------------------------------------------------
def _prepare_patches(params, pixel_values, cfg):
    B, C, H, W = pixel_values.shape
    P = cfg["patch_size"]
    nh, nw = H // P, W // P
    K = C * P * P
    # conv(stride=P) -> flatten(2) -> transpose(1,2): row-major (i, j) patch
    # order; per-patch feature order (c, p, q) matches the conv-weight reshape.
    x = pixel_values.reshape(B, C, nh, P, nw, P)
    x = x.transpose(0, 2, 4, 1, 3, 5).reshape(B * nh * nw, K)
    Kpad = params["patch_w"].shape[0]
    if Kpad != K:
        x = jnp.pad(x, ((0, 0), (0, Kpad - K)))
    return x.astype(jnp.bfloat16)


# --------------------------------------------------------------------------
# Full forward pass.
# --------------------------------------------------------------------------
def siglip_forward(params, pixel_values, *, cfg, gemm_bm=256,
                   patch_bm=256, patch_bn=256, attn_bq=256):
    B, C, H, W = pixel_values.shape
    P = cfg["patch_size"]
    D = cfg["hidden_size"]
    nH = cfg["num_heads"]
    hd = D // nH
    eps = cfg["eps"]
    N = (H // P) * (W // P)
    M = B * N

    # --- embeddings: full-K GEMM with fused pos-emb + conv-bias epilogue ----
    x = _prepare_patches(params, pixel_values, cfg)
    h = patch_embed_gemm(x, params["patch_w"],
                         params["pos"].astype(jnp.bfloat16),
                         params["patch_b"], bm=patch_bm, bn=patch_bn)  # (M, D)

    layers = params["layers"]
    assert layers, "encoder must have at least one layer"
    for li, layer in enumerate(layers):
        last = li == len(layers) - 1
        # LN1 fused into the single [D, 3D] QKV projection.
        qkv = fused_ln_gemm(h, layer["wqkv"], layer["bqkv"],
                            gamma=layer["ln1_g"], beta=layer["ln1_b"],
                            eps=eps, bm=gemm_bm)                       # (M, 3D)
        attn = multihead_attention(qkv.reshape(B, N, 3 * D),
                                   num_heads=nH, head_dim=hd,
                                   scale=hd ** -0.5, bq=attn_bq)       # (B,N,D)
        # out-proj with the residual fused into the epilogue.
        h = fused_ln_gemm(attn.reshape(M, D), layer["wo"], layer["bo"],
                          residual=h, eps=eps, bm=gemm_bm)             # (M, D)
        # LN2 + fc1 + tanh-GELU fused.
        g = fused_ln_gemm(h, layer["w1"], layer["b1"],
                          gamma=layer["ln2_g"], beta=layer["ln2_b"],
                          gelu=True, eps=eps, bm=gemm_bm)
        # fc2 with residual fused; the post-LayerNorm is fused into the LAST
        # layer's fc2 epilogue (saves an (M, D) HBM round trip).
        out_ln = (params["post_g"], params["post_b"]) if last else None
        h = fused_ln_gemm(g, layer["w2"], layer["b2"], residual=h,
                          out_ln=out_ln, eps=eps, bm=gemm_bm)
    return h.reshape(B, N, D)


# --------------------------------------------------------------------------
# Pure-JAX reference (same bf16/f32 discipline as the kernels) for checking.
# --------------------------------------------------------------------------
def _ref_ln(x, g, b, eps):
    x = x.astype(jnp.float32)
    mu = jnp.mean(x, axis=-1, keepdims=True)
    xc = x - mu
    var = jnp.mean(xc * xc, axis=-1, keepdims=True)
    return xc * jax.lax.rsqrt(var + eps) * g + b


def _ref_fused(x, w, bias, *, gamma=None, beta=None, residual=None,
               gelu=False, out_ln=None, eps=1e-6):
    if gamma is not None:
        xf = _ref_ln(x, gamma, beta, eps).astype(jnp.bfloat16)
    else:
        xf = x
    y = jnp.dot(xf.astype(jnp.float32), w.astype(jnp.float32)) + bias
    if gelu:
        y = _gelu_tanh(y)
    if residual is not None:
        y = y + residual.astype(jnp.float32)
    if out_ln is not None:
        y = _ref_ln(y, out_ln[0], out_ln[1], eps)
    return y.astype(jnp.bfloat16)


def _ref_attention(q, k, v, scale):
    qs = (q.astype(jnp.float32) * scale).astype(jnp.bfloat16)
    s = jnp.einsum("bqd,bkd->bqk", qs.astype(jnp.float32),
                   k.astype(jnp.float32))
    p = jax.nn.softmax(s, axis=-1).astype(jnp.bfloat16).astype(jnp.float32)
    o = jnp.einsum("bqk,bkd->bqd", p, v.astype(jnp.float32))
    return o.astype(jnp.bfloat16)


def reference_forward(params, pixel_values, cfg):
    B, C, H, W = pixel_values.shape
    P = cfg["patch_size"]
    D = cfg["hidden_size"]
    nH = cfg["num_heads"]
    hd = D // nH
    eps = cfg["eps"]
    N = (H // P) * (W // P)
    M = B * N

    x = _prepare_patches(params, pixel_values, cfg)
    pos = params["pos"].astype(jnp.bfloat16).astype(jnp.float32)
    h = jnp.dot(x.astype(jnp.float32), params["patch_w"].astype(jnp.float32))
    h = h.reshape(B, N, D) + pos[None] + params["patch_b"][None, None, :]
    h = h.reshape(M, D).astype(jnp.bfloat16)

    layers = params["layers"]
    for li, layer in enumerate(layers):
        last = li == len(layers) - 1
        qkv = _ref_fused(h, layer["wqkv"], layer["bqkv"],
                         gamma=layer["ln1_g"], beta=layer["ln1_b"], eps=eps)
        qkv = qkv.reshape(B, N, 3, nH, hd)
        q = qkv[:, :, 0].transpose(0, 2, 1, 3).reshape(B * nH, N, hd)
        k = qkv[:, :, 1].transpose(0, 2, 1, 3).reshape(B * nH, N, hd)
        v = qkv[:, :, 2].transpose(0, 2, 1, 3).reshape(B * nH, N, hd)
        attn = _ref_attention(q, k, v, hd ** -0.5)
        attn = attn.reshape(B, nH, N, hd).transpose(0, 2, 1, 3).reshape(M, D)
        h = _ref_fused(attn, layer["wo"], layer["bo"], residual=h, eps=eps)
        g = _ref_fused(h, layer["w1"], layer["b1"], gamma=layer["ln2_g"],
                       beta=layer["ln2_b"], gelu=True, eps=eps)
        out_ln = (params["post_g"], params["post_b"]) if last else None
        h = _ref_fused(g, layer["w2"], layer["b2"], residual=h,
                       out_ln=out_ln, eps=eps)
    return h.reshape(B, N, D)


# --------------------------------------------------------------------------
# Deterministic parameter init.
# --------------------------------------------------------------------------
def init_params(key, cfg):
    D = cfg["hidden_size"]
    I = cfg["intermediate_size"]
    C = cfg["num_channels"]
    P = cfg["patch_size"]
    IMG = cfg["image_size"]
    L = cfg["num_layers"]
    N = (IMG // P) ** 2
    K = C * P * P
    Kpad = _round_up(K, 128)
    f32, bf16 = jnp.float32, jnp.bfloat16

    def dense(k, fan_in, shape):
        return jax.random.normal(k, shape, f32) * (fan_in ** -0.5)

    keys = jax.random.split(key, 5 + L)

    w_conv = dense(keys[0], K, (K, D))                    # conv as [K, D]
    patch_w = jnp.zeros((Kpad, D), f32).at[:K, :].set(w_conv).astype(bf16)
    patch_b = 0.02 * jax.random.normal(keys[1], (D,), f32)
    pos = 0.02 * jax.random.normal(keys[2], (N, D), f32)
    post_g = 1.0 + 0.1 * jax.random.normal(keys[3], (D,), f32)
    post_b = 0.05 * jax.random.normal(keys[4], (D,), f32)

    layers = []
    for li in range(L):
        lk = jax.random.split(keys[5 + li], 14)
        wq = dense(lk[0], D, (D, D))
        wk = dense(lk[1], D, (D, D))
        wv = dense(lk[2], D, (D, D))
        layers.append(dict(
            ln1_g=1.0 + 0.1 * jax.random.normal(lk[3], (D,), f32),
            ln1_b=0.05 * jax.random.normal(lk[4], (D,), f32),
            wqkv=jnp.concatenate([wq, wk, wv], axis=1).astype(bf16),  # [D,3D]
            bqkv=0.02 * jax.random.normal(lk[5], (3 * D,), f32),
            wo=dense(lk[6], D, (D, D)).astype(bf16),
            bo=0.02 * jax.random.normal(lk[7], (D,), f32),
            ln2_g=1.0 + 0.1 * jax.random.normal(lk[8], (D,), f32),
            ln2_b=0.05 * jax.random.normal(lk[9], (D,), f32),
            w1=dense(lk[10], D, (D, I)).astype(bf16),
            b1=0.02 * jax.random.normal(lk[11], (I,), f32),
            w2=dense(lk[12], I, (I, D)).astype(bf16),
            b2=0.02 * jax.random.normal(lk[13], (D,), f32),
        ))

    return dict(patch_w=patch_w, patch_b=patch_b, pos=pos,
                post_g=post_g, post_b=post_b, layers=layers)


# --------------------------------------------------------------------------
# Driver.
# --------------------------------------------------------------------------
if __name__ == "__main__":
    cfg = dict(hidden_size=128, intermediate_size=256, num_layers=2,
               num_heads=4, num_channels=3, image_size=32, patch_size=8,
               eps=1e-6)
    key = jax.random.PRNGKey(0)
    kp, kx = jax.random.split(key)
    params = init_params(kp, cfg)

    B = 2
    pixel_values = jax.random.normal(
        kx, (B, cfg["num_channels"], cfg["image_size"], cfg["image_size"]),
        jnp.float32)

    # Small tiles so the multi-block paths (row tiling, q tiling, modulo pos
    # indexing, K/V reuse across q tiles) are exercised at toy shapes;
    # production defaults are the 256-class values in the wrappers.
    fwd = jax.jit(functools.partial(
        siglip_forward, cfg=cfg,
        gemm_bm=16, patch_bm=8, patch_bn=128, attn_bq=8))

    out = jax.block_until_ready(fwd(params, pixel_values))

    N = (cfg["image_size"] // cfg["patch_size"]) ** 2
    assert out.shape == (B, N, cfg["hidden_size"]), out.shape
    out_f32 = out.astype(jnp.float32)
    assert bool(jnp.all(jnp.isfinite(out_f32))), "non-finite output"

    ref = reference_forward(params, pixel_values, cfg).astype(jnp.float32)
    max_diff = float(jnp.max(jnp.abs(out_f32 - ref)))
    assert max_diff < 0.15, f"Pallas vs reference max abs diff too large: {max_diff}"

    print("KERNEL_OK")
</pallas_src>

<mosaic_0001>
module attributes {stable_mosaic.version = 11 : i64} {
  func.func @_patch_embed_kernel(%arg0: i32, %arg1: i32, %arg2: memref<8x256xbf16, #tpu.memory_space<vmem>>, %arg3: memref<256x128xbf16, #tpu.memory_space<vmem>>, %arg4: memref<8x128xbf16, #tpu.memory_space<vmem>>, %arg5: memref<1x128xf32, #tpu.memory_space<vmem>>, %arg6: memref<8x128xbf16, #tpu.memory_space<vmem>>) attributes {dimension_semantics = [#tpu.dimension_semantics<parallel>, #tpu.dimension_semantics<parallel>], iteration_bounds = array<i64: 4, 1>, scalar_prefetch = 0 : i64, scratch_operands = 0 : i64, tpu.core_type = #tpu.core_type<tc>, window_params = [{transform_indices = @transform_0, window_bounds = array<i64: 8, 256>}, {transform_indices = @transform_1, window_bounds = array<i64: 256, 128>}, {transform_indices = @transform_2, window_bounds = array<i64: 8, 128>}, {transform_indices = @transform_3, window_bounds = array<i64: 1, 128>}, {transform_indices = @transform_4, window_bounds = array<i64: 8, 128>}]} {
    %c0 = arith.constant 0 : index
    %c0_0 = arith.constant 0 : index
    %0 = vector.load %arg2[%c0, %c0_0] : memref<8x256xbf16, #tpu.memory_space<vmem>>, vector<8x256xbf16>
    %c0_1 = arith.constant 0 : index
    %c0_2 = arith.constant 0 : index
    %1 = vector.load %arg3[%c0_1, %c0_2] : memref<256x128xbf16, #tpu.memory_space<vmem>>, vector<256x128xbf16>
    %cst = arith.constant dense<0.000000e+00> : vector<8x128xf32>
    %2 = tpu.matmul %0, %1, %cst {dimension_numbers = #tpu.dot_dimension_numbers<[1], [0], [0], [1], [0, 0, 1, 1], [], []>} : vector<8x256xbf16>, vector<256x128xbf16>, vector<8x128xf32> -> vector<8x128xf32>
    %c0_3 = arith.constant 0 : index
    %c0_4 = arith.constant 0 : index
    %3 = vector.load %arg4[%c0_3, %c0_4] : memref<8x128xbf16, #tpu.memory_space<vmem>>, vector<8x128xbf16>
    %4 = arith.extf %3 : vector<8x128xbf16> to vector<8x128xf32>
    %5 = arith.addf %2, %4 : vector<8x128xf32>
    %c0_5 = arith.constant 0 : index
    %c0_6 = arith.constant 0 : index
    %6 = vector.load %arg5[%c0_5, %c0_6] : memref<1x128xf32, #tpu.memory_space<vmem>>, vector<1x128xf32>
    %7 = vector.broadcast %6 : vector<1x128xf32> to vector<8x128xf32>
    %8 = arith.addf %5, %7 : vector<8x128xf32>
    %9 = arith.truncf %8 : vector<8x128xf32> to vector<8x128xbf16>
    %c0_7 = arith.constant 0 : index
    %c0_8 = arith.constant 0 : index
    %10 = vector.load %arg6[%c0_7, %c0_8] : memref<8x128xbf16, #tpu.memory_space<vmem>>, vector<8x128xbf16>
    tpu.vector_store %arg6[%c0_7, %c0_8], %9 {strides = array<i32>} : memref<8x128xbf16, #tpu.memory_space<vmem>>, vector<8x128xbf16>,
    return
  }
  func.func @transform_0(%arg0: i32, %arg1: i32) -> (i32, i32) {
    %c0_i32 = arith.constant 0 : i32
    %c0_i32_0 = arith.constant 0 : i32
    return %arg0, %c0_i32 : i32, i32
  }
  func.func @transform_1(%arg0: i32, %arg1: i32) -> (i32, i32) {
    %c0_i32 = arith.constant 0 : i32
    %c0_i32_0 = arith.constant 0 : i32
    return %c0_i32, %arg1 : i32, i32
  }
  func.func @transform_2(%arg0: i32, %arg1: i32) -> (i32, i32) {
    %c2_i32 = arith.constant 2 : i32
    %c0_i32 = arith.constant 0 : i32
    %0 = arith.cmpi eq, %c2_i32, %c0_i32 : i32
    %c1_i32 = arith.constant 1 : i32
    %1 = arith.select %0, %c1_i32, %c2_i32 : i32
    %2 = arith.remsi %arg0, %1 : i32
    %c0_i32_0 = arith.constant 0 : i32
    %3 = arith.cmpi ne, %2, %c0_i32_0 : i32
    %c0_i32_1 = arith.constant 0 : i32
    %4 = arith.cmpi slt, %2, %c0_i32_1 : i32
    %c0_i32_2 = arith.constant 0 : i32
    %5 = arith.cmpi slt, %1, %c0_i32_2 : i32
    %6 = arith.xori %4, %5 : i1
    %7 = arith.andi %6, %3 : i1
    %8 = arith.addi %2, %1 : i32
    %9 = arith.select %7, %8, %2 : i32
    %c0_i32_3 = arith.constant 0 : i32
    return %9, %arg1 : i32, i32
  }
  func.func @transform_3(%arg0: i32, %arg1: i32) -> (i32, i32) {
    %c0_i32 = arith.constant 0 : i32
    %c0_i32_0 = arith.constant 0 : i32
    return %c0_i32, %arg1 : i32, i32
  }
  func.func @transform_4(%arg0: i32, %arg1: i32) -> (i32, i32) {
    %c0_i32 = arith.constant 0 : i32
    return %arg0, %arg1 : i32, i32
  }
}

module attributes {stable_mosaic.version = 11 : i64} {
  func.func @_mha_kernel(%arg0: i32, %arg1: i32, %arg2: memref<1x8x128xbf16, #tpu.memory_space<vmem>>, %arg3: memref<1x16x128xbf16, #tpu.memory_space<vmem>>, %arg4: memref<1x16x128xbf16, #tpu.memory_space<vmem>>, %arg5: memref<1x8x128xbf16, #tpu.memory_space<vmem>>) attributes {dimension_semantics = [#tpu.dimension_semantics<parallel>, #tpu.dimension_semantics<parallel>], iteration_bounds = array<i64: 2, 2>, scalar_prefetch = 0 : i64, scratch_operands = 0 : i64, tpu.core_type = #tpu.core_type<tc>, window_params = [{transform_indices = @transform_0, window_bounds = array<i64: 1, 8, 128>}, {transform_indices = @transform_1, window_bounds = array<i64: 1, 16, 128>}, {transform_indices = @transform_2, window_bounds = array<i64: 1, 16, 128>}, {transform_indices = @transform_3, window_bounds = array<i64: 1, 8, 128>}]} {
    %c0 = arith.constant 0 : index
    %c0_0 = arith.constant 0 : index
    %c0_1 = arith.constant 0 : index
    %0 = vector.load %arg2[%c0, %c0_0, %c0_1] : memref<1x8x128xbf16, #tpu.memory_space<vmem>>, vector<1x8x128xbf16>
    %1 = vector.shape_cast %0 : vector<1x8x128xbf16> to vector<8x128xbf16>
    %2 = arith.extf %1 : vector<8x128xbf16> to vector<8x128xf32>
    %cst = arith.constant 0.176776692 : f32
    %3 = vector.broadcast %cst : f32 to vector<8x128xf32>
    %4 = arith.mulf %2, %3 : vector<8x128xf32>
    %5 = arith.truncf %4 : vector<8x128xf32> to vector<8x128xbf16>
    %c0_2 = arith.constant 0 : index
    %c0_3 = arith.constant 0 : index
    %c0_4 = arith.constant 0 : index
    %6 = vector.load %arg3[%c0_2, %c0_3, %c0_4] : memref<1x16x128xbf16, #tpu.memory_space<vmem>>, vector<1x16x128xbf16>
    %7 = vector.shape_cast %6 : vector<1x16x128xbf16> to vector<16x128xbf16>
    %c0_5 = arith.constant 0 : index
    %c0_6 = arith.constant 0 : index
    %c0_7 = arith.constant 0 : index
    %8 = vector.load %arg4[%c0_5, %c0_6, %c0_7] : memref<1x16x128xbf16, #tpu.memory_space<vmem>>, vector<1x16x128xbf16>
    %9 = vector.shape_cast %8 : vector<1x16x128xbf16> to vector<16x128xbf16>
    %10 = vector.extract_strided_slice %5 {offsets = [0, 0], sizes = [8, 32], strides = [1, 1]} : vector<8x128xbf16> to vector<8x32xbf16>
    %11 = vector.extract_strided_slice %7 {offsets = [0, 0], sizes = [16, 32], strides = [1, 1]} : vector<16x128xbf16> to vector<16x32xbf16>
    %cst_8 = arith.constant dense<0.000000e+00> : vector<8x16xf32>
    %12 = tpu.matmul %10, %11, %cst_8 {dimension_numbers = #tpu.dot_dimension_numbers<[1], [1], [0], [0], [0, 0, 1, 0], [], []>} : vector<8x32xbf16>, vector<16x32xbf16>, vector<8x16xf32> -> vector<8x16xf32>
    %cst_9 = arith.constant dense<0xFF800000> : vector<8xf32>
    %13 = vector.multi_reduction <maximumf>, %12, %cst_9 [1] : vector<8x16xf32> to vector<8xf32>
    %14 = vector.shape_cast %13 : vector<8xf32> to vector<8x1xf32>
    %15 = vector.broadcast %14 : vector<8x1xf32> to vector<8x16xf32>
    %16 = arith.subf %12, %15 : vector<8x16xf32>
    %17 = math.exp %16 : vector<8x16xf32>
    %cst_10 = arith.constant dense<0.000000e+00> : vector<8xf32>
    %18 = vector.multi_reduction <add>, %17, %cst_10 [1] : vector<8x16xf32> to vector<8xf32>
    %19 = vector.shape_cast %18 : vector<8xf32> to vector<8x1xf32>
    %20 = arith.truncf %17 : vector<8x16xf32> to vector<8x16xbf16>
    %21 = vector.extract_strided_slice %9 {offsets = [0, 0], sizes = [16, 32], strides = [1, 1]} : vector<16x128xbf16> to vector<16x32xbf16>
    %cst_11 = arith.constant dense<0.000000e+00> : vector<8x32xf32>
    %22 = tpu.matmul %20, %21, %cst_11 {dimension_numbers = #tpu.dot_dimension_numbers<[1], [0], [0], [1], [0, 0, 1, 1], [], []>} : vector<8x16xbf16>, vector<16x32xbf16>, vector<8x32xf32> -> vector<8x32xf32>
    %23 = tpu.reciprocal %19 {approx = true} : vector<8x1xf32> -> vector<8x1xf32>
    %24 = vector.broadcast %23 : vector<8x1xf32> to vector<8x32xf32>
    %25 = arith.mulf %22, %24 : vector<8x32xf32>
    %26 = vector.extract_strided_slice %5 {offsets = [0, 32], sizes = [8, 32], strides = [1, 1]} : vector<8x128xbf16> to vector<8x32xbf16>
    %27 = vector.extract_strided_slice %7 {offsets = [0, 32], sizes = [16, 32], strides = [1, 1]} : vector<16x128xbf16> to vector<16x32xbf16>
    %cst_12 = arith.constant dense<0.000000e+00> : vector<8x16xf32>
    %28 = tpu.matmul %26, %27, %cst_12 {dimension_numbers = #tpu.dot_dimension_numbers<[1], [1], [0], [0], [0, 0, 1, 0], [], []>} : vector<8x32xbf16>, vector<16x32xbf16>, vector<8x16xf32> -> vector<8x16xf32>
    %cst_13 = arith.constant dense<0xFF800000> : vector<8xf32>
    %29 = vector.multi_reduction <maximumf>, %28, %cst_13 [1] : vector<8x16xf32> to vector<8xf32>
    %30 = vector.shape_cast %29 : vector<8xf32> to vector<8x1xf32>
    %31 = vector.broadcast %30 : vector<8x1xf32> to vector<8x16xf32>
    %32 = arith.subf %28, %31 : vector<8x16xf32>
    %33 = math.exp %32 : vector<8x16xf32>
    %cst_14 = arith.constant dense<0.000000e+00> : vector<8xf32>
    %34 = vector.multi_reduction <add>, %33, %cst_14 [1] : vector<8x16xf32> to vector<8xf32>
    %35 = vector.shape_cast %34 : vector<8xf32> to vector<8x1xf32>
    %36 = arith.truncf %33 : vector<8x16xf32> to vector<8x16xbf16>
    %37 = vector.extract_strided_slice %9 {offsets = [0, 32], sizes = [16, 32], strides = [1, 1]} : vector<16x128xbf16> to vector<16x32xbf16>
    %cst_15 = arith.constant dense<0.000000e+00> : vector<8x32xf32>
    %38 = tpu.matmul %36, %37, %cst_15 {dimension_numbers = #tpu.dot_dimension_numbers<[1], [0], [0], [1], [0, 0, 1, 1], [], []>} : vector<8x16xbf16>, vector<16x32xbf16>, vector<8x32xf32> -> vector<8x32xf32>
    %39 = tpu.reciprocal %35 {approx = true} : vector<8x1xf32> -> vector<8x1xf32>
    %40 = vector.broadcast %39 : vector<8x1xf32> to vector<8x32xf32>
    %41 = arith.mulf %38, %40 : vector<8x32xf32>
    %42 = vector.extract_strided_slice %5 {offsets = [0, 64], sizes = [8, 32], strides = [1, 1]} : vector<8x128xbf16> to vector<8x32xbf16>
    %43 = vector.extract_strided_slice %7 {offsets = [0, 64], sizes = [16, 32], strides = [1, 1]} : vector<16x128xbf16> to vector<16x32xbf16>
    %cst_16 = arith.constant dense<0.000000e+00> : vector<8x16xf32>
    %44 = tpu.matmul %42, %43, %cst_16 {dimension_numbers = #tpu.dot_dimension_numbers<[1], [1], [0], [0], [0, 0, 1, 0], [], []>} : vector<8x32xbf16>, vector<16x32xbf16>, vector<8x16xf32> -> vector<8x16xf32>
    %cst_17 = arith.constant dense<0xFF800000> : vector<8xf32>
    %45 = vector.multi_reduction <maximumf>, %44, %cst_17 [1] : vector<8x16xf32> to vector<8xf32>
    %46 = vector.shape_cast %45 : vector<8xf32> to vector<8x1xf32>
    %47 = vector.broadcast %46 : vector<8x1xf32> to vector<8x16xf32>
    %48 = arith.subf %44, %47 : vector<8x16xf32>
    %49 = math.exp %48 : vector<8x16xf32>
    %cst_18 = arith.constant dense<0.000000e+00> : vector<8xf32>
    %50 = vector.multi_reduction <add>, %49, %cst_18 [1] : vector<8x16xf32> to vector<8xf32>
    %51 = vector.shape_cast %50 : vector<8xf32> to vector<8x1xf32>
    %52 = arith.truncf %49 : vector<8x16xf32> to vector<8x16xbf16>
    %53 = vector.extract_strided_slice %9 {offsets = [0, 64], sizes = [16, 32], strides = [1, 1]} : vector<16x128xbf16> to vector<16x32xbf16>
    %cst_19 = arith.constant dense<0.000000e+00> : vector<8x32xf32>
    %54 = tpu.matmul %52, %53, %cst_19 {dimension_numbers = #tpu.dot_dimension_numbers<[1], [0], [0], [1], [0, 0, 1, 1], [], []>} : vector<8x16xbf16>, vector<16x32xbf16>, vector<8x32xf32> -> vector<8x32xf32>
    %55 = tpu.reciprocal %51 {approx = true} : vector<8x1xf32> -> vector<8x1xf32>
    %56 = vector.broadcast %55 : vector<8x1xf32> to vector<8x32xf32>
    %57 = arith.mulf %54, %56 : vector<8x32xf32>
    %58 = vector.extract_strided_slice %5 {offsets = [0, 96], sizes = [8, 32], strides = [1, 1]} : vector<8x128xbf16> to vector<8x32xbf16>
    %59 = vector.extract_strided_slice %7 {offsets = [0, 96], sizes = [16, 32], strides = [1, 1]} : vector<16x128xbf16> to vector<16x32xbf16>
    %cst_20 = arith.constant dense<0.000000e+00> : vector<8x16xf32>
    %60 = tpu.matmul %58, %59, %cst_20 {dimension_numbers = #tpu.dot_dimension_numbers<[1], [1], [0], [0], [0, 0, 1, 0], [], []>} : vector<8x32xbf16>, vector<16x32xbf16>, vector<8x16xf32> -> vector<8x16xf32>
    %cst_21 = arith.constant dense<0xFF800000> : vector<8xf32>
    %61 = vector.multi_reduction <maximumf>, %60, %cst_21 [1] : vector<8x16xf32> to vector<8xf32>
    %62 = vector.shape_cast %61 : vector<8xf32> to vector<8x1xf32>
    %63 = vector.broadcast %62 : vector<8x1xf32> to vector<8x16xf32>
    %64 = arith.subf %60, %63 : vector<8x16xf32>
    %65 = math.exp %64 : vector<8x16xf32>
    %cst_22 = arith.constant dense<0.000000e+00> : vector<8xf32>
    %66 = vector.multi_reduction <add>, %65, %cst_22 [1] : vector<8x16xf32> to vector<8xf32>
    %67 = vector.shape_cast %66 : vector<8xf32> to vector<8x1xf32>
    %68 = arith.truncf %65 : vector<8x16xf32> to vector<8x16xbf16>
    %69 = vector.extract_strided_slice %9 {offsets = [0, 96], sizes = [16, 32], strides = [1, 1]} : vector<16x128xbf16> to vector<16x32xbf16>
    %cst_23 = arith.constant dense<0.000000e+00> : vector<8x32xf32>
    %70 = tpu.matmul %68, %69, %cst_23 {dimension_numbers = #tpu.dot_dimension_numbers<[1], [0], [0], [1], [0, 0, 1, 1], [], []>} : vector<8x16xbf16>, vector<16x32xbf16>, vector<8x32xf32> -> vector<8x32xf32>
    %71 = tpu.reciprocal %67 {approx = true} : vector<8x1xf32> -> vector<8x1xf32>
    %72 = vector.broadcast %71 : vector<8x1xf32> to vector<8x32xf32>
    %73 = arith.mulf %70, %72 : vector<8x32xf32>
    %74 = tpu.concatenate %25, %41, %57, %73 in 1 : vector<8x32xf32>, vector<8x32xf32>, vector<8x32xf32>, vector<8x32xf32> -> vector<8x128xf32>
    %75 = arith.truncf %74 : vector<8x128xf32> to vector<8x128xbf16>
    %c0_24 = arith.constant 0 : index
    %c0_25 = arith.constant 0 : index
    %c0_26 = arith.constant 0 : index
    %76 = vector.load %arg5[%c0_24, %c0_25, %c0_26] : memref<1x8x128xbf16, #tpu.memory_space<vmem>>, vector<1x8x128xbf16>
    %77 = vector.shape_cast %76 : vector<1x8x128xbf16> to vector<8x128xbf16>
    %78 = vector.shape_cast %75 : vector<8x128xbf16> to vector<1x8x128xbf16>
    tpu.vector_store %arg5[%c0_24, %c0_25, %c0_26], %78 {strides = array<i32>} : memref<1x8x128xbf16, #tpu.memory_space<vmem>>, vector<1x8x128xbf16>,
    return
  }
  func.func @transform_0(%arg0: i32, %arg1: i32) -> (i32, i32, i32) {
    %c0_i32 = arith.constant 0 : i32
    %c0_i32_0 = arith.constant 0 : i32
    return %arg0, %arg1, %c0_i32 : i32, i32, i32
  }
  func.func @transform_1(%arg0: i32, %arg1: i32) -> (i32, i32, i32) {
    %c0_i32 = arith.constant 0 : i32
    %c1_i32 = arith.constant 1 : i32
    %c0_i32_0 = arith.constant 0 : i32
    return %arg0, %c0_i32, %c1_i32 : i32, i32, i32
  }
  func.func @transform_2(%arg0: i32, %arg1: i32) -> (i32, i32, i32) {
    %c0_i32 = arith.constant 0 : i32
    %c2_i32 = arith.constant 2 : i32
    %c0_i32_0 = arith.constant 0 : i32
    return %arg0, %c0_i32, %c2_i32 : i32, i32, i32
  }
  func.func @transform_3(%arg0: i32, %arg1: i32) -> (i32, i32, i32) {
    %c0_i32 = arith.constant 0 : i32
    %c0_i32_0 = arith.constant 0 : i32
    return %arg0, %arg1, %c0_i32 : i32, i32, i32
  }
}

module attributes {stable_mosaic.version = 11 : i64} {
  func.func @kernel(%arg0: i32, %arg1: memref<16x128xbf16, #tpu.memory_space<vmem>>, %arg2: memref<1x128xf32, #tpu.memory_space<vmem>>, %arg3: memref<1x128xf32, #tpu.memory_space<vmem>>, %arg4: memref<128x384xbf16, #tpu.memory_space<vmem>>, %arg5: memref<1x384xf32, #tpu.memory_space<vmem>>, %arg6: memref<16x384xbf16, #tpu.memory_space<vmem>>) attributes {dimension_semantics = [#tpu.dimension_semantics<parallel>], iteration_bounds = array<i64: 2>, scalar_prefetch = 0 : i64, scratch_operands = 0 : i64, tpu.core_type = #tpu.core_type<tc>, window_params = [{transform_indices = @transform_0, window_bounds = array<i64: 16, 128>}, {pipeline_mode = #tpu.pipeline_mode<synchronous>, transform_indices = @transform_1, window_bounds = array<i64: 1, 128>}, {pipeline_mode = #tpu.pipeline_mode<synchronous>, transform_indices = @transform_2, window_bounds = array<i64: 1, 128>}, {pipeline_mode = #tpu.pipeline_mode<synchronous>, transform_indices = @transform_3, window_bounds = array<i64: 128, 384>}, {pipeline_mode = #tpu.pipeline_mode<synchronous>, transform_indices = @transform_4, window_bounds = array<i64: 1, 384>}, {transform_indices = @transform_5, window_bounds = array<i64: 16, 384>}]} {
    %c0 = arith.constant 0 : index
    %c0_0 = arith.constant 0 : index
    %0 = vector.load %arg1[%c0, %c0_0] : memref<16x128xbf16, #tpu.memory_space<vmem>>, vector<16x128xbf16>
    %1 = arith.extf %0 : vector<16x128xbf16> to vector<16x128xf32>
    %cst = arith.constant dense<0.000000e+00> : vector<16xf32>
    %2 = vector.multi_reduction <add>, %1, %cst [1] : vector<16x128xf32> to vector<16xf32>
    %3 = vector.shape_cast %2 : vector<16xf32> to vector<16x1xf32>
    %cst_1 = arith.constant 1.280000e+02 : f32
    %4 = vector.broadcast %cst_1 : f32 to vector<16x1xf32>
    %5 = arith.divf %3, %4 : vector<16x1xf32>
    %6 = vector.broadcast %5 : vector<16x1xf32> to vector<16x128xf32>
    %7 = arith.subf %1, %6 : vector<16x128xf32>
    %8 = arith.mulf %7, %7 : vector<16x128xf32>
    %cst_2 = arith.constant dense<0.000000e+00> : vector<16xf32>
    %9 = vector.multi_reduction <add>, %8, %cst_2 [1] : vector<16x128xf32> to vector<16xf32>
    %10 = vector.shape_cast %9 : vector<16xf32> to vector<16x1xf32>
    %cst_3 = arith.constant 1.280000e+02 : f32
    %11 = vector.broadcast %cst_3 : f32 to vector<16x1xf32>
    %12 = arith.divf %10, %11 : vector<16x1xf32>
    %cst_4 = arith.constant 9.99999997E-7 : f32
    %13 = vector.broadcast %cst_4 : f32 to vector<16x1xf32>
    %14 = arith.addf %12, %13 : vector<16x1xf32>
    %15 = math.rsqrt %14 : vector<16x1xf32>
    %16 = vector.broadcast %15 : vector<16x1xf32> to vector<16x128xf32>
    %17 = arith.mulf %7, %16 : vector<16x128xf32>
    %c0_5 = arith.constant 0 : index
    %c0_6 = arith.constant 0 : index
    %18 = vector.load %arg2[%c0_5, %c0_6] : memref<1x128xf32, #tpu.memory_space<vmem>>, vector<1x128xf32>
    %19 = vector.broadcast %18 : vector<1x128xf32> to vector<16x128xf32>
    %20 = arith.mulf %17, %19 : vector<16x128xf32>
    %c0_7 = arith.constant 0 : index
    %c0_8 = arith.constant 0 : index
    %21 = vector.load %arg3[%c0_7, %c0_8] : memref<1x128xf32, #tpu.memory_space<vmem>>, vector<1x128xf32>
    %22 = vector.broadcast %21 : vector<1x128xf32> to vector<16x128xf32>
    %23 = arith.addf %20, %22 : vector<16x128xf32>
    %24 = arith.truncf %23 : vector<16x128xf32> to vector<16x128xbf16>
    %c0_9 = arith.constant 0 : index
    %c0_10 = arith.constant 0 : index
    %25 = vector.load %arg4[%c0_9, %c0_10] : memref<128x384xbf16, #tpu.memory_space<vmem>>, vector<128x384xbf16>
    %cst_11 = arith.constant dense<0.000000e+00> : vector<16x384xf32>
    %26 = tpu.matmul %24, %25, %cst_11 {dimension_numbers = #tpu.dot_dimension_numbers<[1], [0], [0], [1], [0, 0, 1, 1], [], []>} : vector<16x128xbf16>, vector<128x384xbf16>, vector<16x384xf32> -> vector<16x384xf32>
    %c0_12 = arith.constant 0 : index
    %c0_13 = arith.constant 0 : index
    %27 = vector.load %arg5[%c0_12, %c0_13] : memref<1x384xf32, #tpu.memory_space<vmem>>, vector<1x384xf32>
    %28 = vector.broadcast %27 : vector<1x384xf32> to vector<16x384xf32>
    %29 = arith.addf %26, %28 : vector<16x384xf32>
    %30 = arith.truncf %29 : vector<16x384xf32> to vector<16x384xbf16>
    %c0_14 = arith.constant 0 : index
    %c0_15 = arith.constant 0 : index
    %31 = vector.load %arg6[%c0_14, %c0_15] : memref<16x384xbf16, #tpu.memory_space<vmem>>, vector<16x384xbf16>
    tpu.vector_store %arg6[%c0_14, %c0_15], %30 {strides = array<i32>} : memref<16x384xbf16, #tpu.memory_space<vmem>>, vector<16x384xbf16>,
    return
  }
  func.func @transform_0(%arg0: i32) -> (i32, i32) {
    %c0_i32 = arith.constant 0 : i32
    %c0_i32_0 = arith.constant 0 : i32
    return %arg0, %c0_i32 : i32, i32
  }
  func.func @transform_1(%arg0: i32) -> (i32, i32) {
    %c0_i32 = arith.constant 0 : i32
    %c0_i32_0 = arith.constant 0 : i32
    %c0_i32_1 = arith.constant 0 : i32
    return %c0_i32, %c0_i32_0 : i32, i32
  }
  func.func @transform_2(%arg0: i32) -> (i32, i32) {
    %c0_i32 = arith.constant 0 : i32
    %c0_i32_0 = arith.constant 0 : i32
    %c0_i32_1 = arith.constant 0 : i32
    return %c0_i32, %c0_i32_0 : i32, i32
  }
  func.func @transform_3(%arg0: i32) -> (i32, i32) {
    %c0_i32 = arith.constant 0 : i32
    %c0_i32_0 = arith.constant 0 : i32
    %c0_i32_1 = arith.constant 0 : i32
    return %c0_i32, %c0_i32_0 : i32, i32
  }
  func.func @transform_4(%arg0: i32) -> (i32, i32) {
    %c0_i32 = arith.constant 0 : i32
    %c0_i32_0 = arith.constant 0 : i32
    %c0_i32_1 = arith.constant 0 : i32
    return %c0_i32, %c0_i32_0 : i32, i32
  }
  func.func @transform_5(%arg0: i32) -> (i32, i32) {
    %c0_i32 = arith.constant 0 : i32
    %c0_i32_0 = arith.constant 0 : i32
    return %arg0, %c0_i32 : i32, i32
  }
}

module attributes {stable_mosaic.version = 11 : i64} {
  func.func @kernel(%arg0: i32, %arg1: memref<16x128xbf16, #tpu.memory_space<vmem>>, %arg2: memref<128x128xbf16, #tpu.memory_space<vmem>>, %arg3: memref<1x128xf32, #tpu.memory_space<vmem>>, %arg4: memref<16x128xbf16, #tpu.memory_space<vmem>>, %arg5: memref<16x128xbf16, #tpu.memory_space<vmem>>) attributes {dimension_semantics = [#tpu.dimension_semantics<parallel>], iteration_bounds = array<i64: 2>, scalar_prefetch = 0 : i64, scratch_operands = 0 : i64, tpu.core_type = #tpu.core_type<tc>, window_params = [{transform_indices = @transform_0, window_bounds = array<i64: 16, 128>}, {pipeline_mode = #tpu.pipeline_mode<synchronous>, transform_indices = @transform_1, window_bounds = array<i64: 128, 128>}, {pipeline_mode = #tpu.pipeline_mode<synchronous>, transform_indices = @transform_2, window_bounds = array<i64: 1, 128>}, {transform_indices = @transform_3, window_bounds = array<i64: 16, 128>}, {transform_indices = @transform_4, window_bounds = array<i64: 16, 128>}]} {
    %c0 = arith.constant 0 : index
    %c0_0 = arith.constant 0 : index
    %0 = vector.load %arg1[%c0, %c0_0] : memref<16x128xbf16, #tpu.memory_space<vmem>>, vector<16x128xbf16>
    %c0_1 = arith.constant 0 : index
    %c0_2 = arith.constant 0 : index
    %1 = vector.load %arg2[%c0_1, %c0_2] : memref<128x128xbf16, #tpu.memory_space<vmem>>, vector<128x128xbf16>
    %cst = arith.constant dense<0.000000e+00> : vector<16x128xf32>
    %2 = tpu.matmul %0, %1, %cst {dimension_numbers = #tpu.dot_dimension_numbers<[1], [0], [0], [1], [0, 0, 1, 1], [], []>} : vector<16x128xbf16>, vector<128x128xbf16>, vector<16x128xf32> -> vector<16x128xf32>
    %c0_3 = arith.constant 0 : index
    %c0_4 = arith.constant 0 : index
    %3 = vector.load %arg3[%c0_3, %c0_4] : memref<1x128xf32, #tpu.memory_space<vmem>>, vector<1x128xf32>
    %4 = vector.broadcast %3 : vector<1x128xf32> to vector<16x128xf32>
    %5 = arith.addf %2, %4 : vector<16x128xf32>
    %c0_5 = arith.constant 0 : index
    %c0_6 = arith.constant 0 : index
    %6 = vector.load %arg4[%c0_5, %c0_6] : memref<16x128xbf16, #tpu.memory_space<vmem>>, vector<16x128xbf16>
    %7 = arith.extf %6 : vector<16x128xbf16> to vector<16x128xf32>
    %8 = arith.addf %5, %7 : vector<16x128xf32>
    %9 = arith.truncf %8 : vector<16x128xf32> to vector<16x128xbf16>
    %c0_7 = arith.constant 0 : index
    %c0_8 = arith.constant 0 : index
    %10 = vector.load %arg5[%c0_7, %c0_8] : memref<16x128xbf16, #tpu.memory_space<vmem>>, vector<16x128xbf16>
    tpu.vector_store %arg5[%c0_7, %c0_8], %9 {strides = array<i32>} : memref<16x128xbf16, #tpu.memory_space<vmem>>, vector<16x128xbf16>,
    return
  }
  func.func @transform_0(%arg0: i32) -> (i32, i32) {
    %c0_i32 = arith.constant 0 : i32
    %c0_i32_0 = arith.constant 0 : i32
    return %arg0, %c0_i32 : i32, i32
  }
  func.func @transform_1(%arg0: i32) -> (i32, i32) {
    %c0_i32 = arith.constant 0 : i32
    %c0_i32_0 = arith.constant 0 : i32
    %c0_i32_1 = arith.constant 0 : i32
    return %c0_i32, %c0_i32_0 : i32, i32
  }
  func.func @transform_2(%arg0: i32) -> (i32, i32) {
    %c0_i32 = arith.constant 0 : i32
    %c0_i32_0 = arith.constant 0 : i32
    %c0_i32_1 = arith.constant 0 : i32
    return %c0_i32, %c0_i32_0 : i32, i32
  }
  func.func @transform_3(%arg0: i32) -> (i32, i32) {
    %c0_i32 = arith.constant 0 : i32
    %c0_i32_0 = arith.constant 0 : i32
    return %arg0, %c0_i32 : i32, i32
  }
  func.func @transform_4(%arg0: i32) -> (i32, i32) {
    %c0_i32 = arith.constant 0 : i32
    %c0_i32_0 = arith.constant 0 : i32
    return %arg0, %c0_i32 : i32, i32
  }
}

module attributes {stable_mosaic.version = 11 : i64} {
  func.func @kernel(%arg0: i32, %arg1: memref<16x256xbf16, #tpu.memory_space<vmem>>, %arg2: memref<256x128xbf16, #tpu.memory_space<vmem>>, %arg3: memref<1x128xf32, #tpu.memory_space<vmem>>, %arg4: memref<16x128xbf16, #tpu.memory_space<vmem>>, %arg5: memref<16x128xbf16, #tpu.memory_space<vmem>>) attributes {dimension_semantics = [#tpu.dimension_semantics<parallel>], iteration_bounds = array<i64: 2>, scalar_prefetch = 0 : i64, scratch_operands = 0 : i64, tpu.core_type = #tpu.core_type<tc>, window_params = [{transform_indices = @transform_0, window_bounds = array<i64: 16, 256>}, {pipeline_mode = #tpu.pipeline_mode<synchronous>, transform_indices = @transform_1, window_bounds = array<i64: 256, 128>}, {pipeline_mode = #tpu.pipeline_mode<synchronous>, transform_indices = @transform_2, window_bounds = array<i64: 1, 128>}, {transform_indices = @transform_3, window_bounds = array<i64: 16, 128>}, {transform_indices = @transform_4, window_bounds = array<i64: 16, 128>}]} {
    %c0 = arith.constant 0 : index
    %c0_0 = arith.constant 0 : index
    %0 = vector.load %arg1[%c0, %c0_0] : memref<16x256xbf16, #tpu.memory_space<vmem>>, vector<16x256xbf16>
    %c0_1 = arith.constant 0 : index
    %c0_2 = arith.constant 0 : index
    %1 = vector.load %arg2[%c0_1, %c0_2] : memref<256x128xbf16, #tpu.memory_space<vmem>>, vector<256x128xbf16>
    %cst = arith.constant dense<0.000000e+00> : vector<16x128xf32>
    %2 = tpu.matmul %0, %1, %cst {dimension_numbers = #tpu.dot_dimension_numbers<[1], [0], [0], [1], [0, 0, 1, 1], [], []>} : vector<16x256xbf16>, vector<256x128xbf16>, vector<16x128xf32> -> vector<16x128xf32>
    %c0_3 = arith.constant 0 : index
    %c0_4 = arith.constant 0 : index
    %3 = vector.load %arg3[%c0_3, %c0_4] : memref<1x128xf32, #tpu.memory_space<vmem>>, vector<1x128xf32>
    %4 = vector.broadcast %3 : vector<1x128xf32> to vector<16x128xf32>
    %5 = arith.addf %2, %4 : vector<16x128xf32>
    %c0_5 = arith.constant 0 : index
    %c0_6 = arith.constant 0 : index
    %6 = vector.load %arg4[%c0_5, %c0_6] : memref<16x128xbf16, #tpu.memory_space<vmem>>, vector<16x128xbf16>
    %7 = arith.extf %6 : vector<16x128xbf16> to vector<16x128xf32>
    %8 = arith.addf %5, %7 : vector<16x128xf32>
    %9 = arith.truncf %8 : vector<16x128xf32> to vector<16x128xbf16>
    %c0_7 = arith.constant 0 : index
    %c0_8 = arith.constant 0 : index
    %10 = vector.load %arg5[%c0_7, %c0_8] : memref<16x128xbf16, #tpu.memory_space<vmem>>, vector<16x128xbf16>
    tpu.vector_store %arg5[%c0_7, %c0_8], %9 {strides = array<i32>} : memref<16x128xbf16, #tpu.memory_space<vmem>>, vector<16x128xbf16>,
    return
  }
  func.func @transform_0(%arg0: i32) -> (i32, i32) {
    %c0_i32 = arith.constant 0 : i32
    %c0_i32_0 = arith.constant 0 : i32
    return %arg0, %c0_i32 : i32, i32
  }
  func.func @transform_1(%arg0: i32) -> (i32, i32) {
    %c0_i32 = arith.constant 0 : i32
    %c0_i32_0 = arith.constant 0 : i32
    %c0_i32_1 = arith.constant 0 : i32
    return %c0_i32, %c0_i32_0 : i32, i32
  }
  func.func @transform_2(%arg0: i32) -> (i32, i32) {
    %c0_i32 = arith.constant 0 : i32
    %c0_i32_0 = arith.constant 0 : i32
    %c0_i32_1 = arith.constant 0 : i32
    return %c0_i32, %c0_i32_0 : i32, i32
  }
  func.func @transform_3(%arg0: i32) -> (i32, i32) {
    %c0_i32 = arith.constant 0 : i32
    %c0_i32_0 = arith.constant 0 : i32
    return %arg0, %c0_i32 : i32, i32
  }
  func.func @transform_4(%arg0: i32) -> (i32, i32) {
    %c0_i32 = arith.constant 0 : i32
    %c0_i32_0 = arith.constant 0 : i32
    return %arg0, %c0_i32 : i32, i32
  }
}

module attributes {stable_mosaic.version = 11 : i64} {
  func.func @kernel(%arg0: i32, %arg1: memref<16x256xbf16, #tpu.memory_space<vmem>>, %arg2: memref<256x128xbf16, #tpu.memory_space<vmem>>, %arg3: memref<1x128xf32, #tpu.memory_space<vmem>>, %arg4: memref<16x128xbf16, #tpu.memory_space<vmem>>, %arg5: memref<1x128xf32, #tpu.memory_space<vmem>>, %arg6: memref<1x128xf32, #tpu.memory_space<vmem>>, %arg7: memref<16x128xbf16, #tpu.memory_space<vmem>>) attributes {dimension_semantics = [#tpu.dimension_semantics<parallel>], iteration_bounds = array<i64: 2>, scalar_prefetch = 0 : i64, scratch_operands = 0 : i64, tpu.core_type = #tpu.core_type<tc>, window_params = [{transform_indices = @transform_0, window_bounds = array<i64: 16, 256>}, {pipeline_mode = #tpu.pipeline_mode<synchronous>, transform_indices = @transform_1, window_bounds = array<i64: 256, 128>}, {pipeline_mode = #tpu.pipeline_mode<synchronous>, transform_indices = @transform_2, window_bounds = array<i64: 1, 128>}, {transform_indices = @transform_3, window_bounds = array<i64: 16, 128>}, {pipeline_mode = #tpu.pipeline_mode<synchronous>, transform_indices = @transform_4, window_bounds = array<i64: 1, 128>}, {pipeline_mode = #tpu.pipeline_mode<synchronous>, transform_indices = @transform_5, window_bounds = array<i64: 1, 128>}, {transform_indices = @transform_6, window_bounds = array<i64: 16, 128>}]} {
    %c0 = arith.constant 0 : index
    %c0_0 = arith.constant 0 : index
    %0 = vector.load %arg1[%c0, %c0_0] : memref<16x256xbf16, #tpu.memory_space<vmem>>, vector<16x256xbf16>
    %c0_1 = arith.constant 0 : index
    %c0_2 = arith.constant 0 : index
    %1 = vector.load %arg2[%c0_1, %c0_2] : memref<256x128xbf16, #tpu.memory_space<vmem>>, vector<256x128xbf16>
    %cst = arith.constant dense<0.000000e+00> : vector<16x128xf32>
    %2 = tpu.matmul %0, %1, %cst {dimension_numbers = #tpu.dot_dimension_numbers<[1], [0], [0], [1], [0, 0, 1, 1], [], []>} : vector<16x256xbf16>, vector<256x128xbf16>, vector<16x128xf32> -> vector<16x128xf32>
    %c0_3 = arith.constant 0 : index
    %c0_4 = arith.constant 0 : index
    %3 = vector.load %arg3[%c0_3, %c0_4] : memref<1x128xf32, #tpu.memory_space<vmem>>, vector<1x128xf32>
    %4 = vector.broadcast %3 : vector<1x128xf32> to vector<16x128xf32>
    %5 = arith.addf %2, %4 : vector<16x128xf32>
    %c0_5 = arith.constant 0 : index
    %c0_6 = arith.constant 0 : index
    %6 = vector.load %arg4[%c0_5, %c0_6] : memref<16x128xbf16, #tpu.memory_space<vmem>>, vector<16x128xbf16>
    %7 = arith.extf %6 : vector<16x128xbf16> to vector<16x128xf32>
    %8 = arith.addf %5, %7 : vector<16x128xf32>
    %cst_7 = arith.constant dense<0.000000e+00> : vector<16xf32>
    %9 = vector.multi_reduction <add>, %8, %cst_7 [1] : vector<16x128xf32> to vector<16xf32>
    %10 = vector.shape_cast %9 : vector<16xf32> to vector<16x1xf32>
    %cst_8 = arith.constant 1.280000e+02 : f32
    %11 = vector.broadcast %cst_8 : f32 to vector<16x1xf32>
    %12 = arith.divf %10, %11 : vector<16x1xf32>
    %13 = vector.broadcast %12 : vector<16x1xf32> to vector<16x128xf32>
    %14 = arith.subf %8, %13 : vector<16x128xf32>
    %15 = arith.mulf %14, %14 : vector<16x128xf32>
    %cst_9 = arith.constant dense<0.000000e+00> : vector<16xf32>
    %16 = vector.multi_reduction <add>, %15, %cst_9 [1] : vector<16x128xf32> to vector<16xf32>
    %17 = vector.shape_cast %16 : vector<16xf32> to vector<16x1xf32>
    %cst_10 = arith.constant 1.280000e+02 : f32
    %18 = vector.broadcast %cst_10 : f32 to vector<16x1xf32>
    %19 = arith.divf %17, %18 : vector<16x1xf32>
    %cst_11 = arith.constant 9.99999997E-7 : f32
    %20 = vector.broadcast %cst_11 : f32 to vector<16x1xf32>
    %21 = arith.addf %19, %20 : vector<16x1xf32>
    %22 = math.rsqrt %21 : vector<16x1xf32>
    %23 = vector.broadcast %22 : vector<16x1xf32> to vector<16x128xf32>
    %24 = arith.mulf %14, %23 : vector<16x128xf32>
    %c0_12 = arith.constant 0 : index
    %c0_13 = arith.constant 0 : index
    %25 = vector.load %arg5[%c0_12, %c0_13] : memref<1x128xf32, #tpu.memory_space<vmem>>, vector<1x128xf32>
    %26 = vector.broadcast %25 : vector<1x128xf32> to vector<16x128xf32>
    %27 = arith.mulf %24, %26 : vector<16x128xf32>
    %c0_14 = arith.constant 0 : index
    %c0_15 = arith.constant 0 : index
    %28 = vector.load %arg6[%c0_14, %c0_15] : memref<1x128xf32, #tpu.memory_space<vmem>>, vector<1x128xf32>
    %29 = vector.broadcast %28 : vector<1x128xf32> to vector<16x128xf32>
    %30 = arith.addf %27, %29 : vector<16x128xf32>
    %31 = arith.truncf %30 : vector<16x128xf32> to vector<16x128xbf16>
    %c0_16 = arith.constant 0 : index
    %c0_17 = arith.constant 0 : index
    %32 = vector.load %arg7[%c0_16, %c0_17] : memref<16x128xbf16, #tpu.memory_space<vmem>>, vector<16x128xbf16>
    tpu.vector_store %arg7[%c0_16, %c0_17], %31 {strides = array<i32>} : memref<16x128xbf16, #tpu.memory_space<vmem>>, vector<16x128xbf16>,
    return
  }
  func.func @transform_0(%arg0: i32) -> (i32, i32) {
    %c0_i32 = arith.constant 0 : i32
    %c0_i32_0 = arith.constant 0 : i32
    return %arg0, %c0_i32 : i32, i32
  }
  func.func @transform_1(%arg0: i32) -> (i32, i32) {
    %c0_i32 = arith.constant 0 : i32
    %c0_i32_0 = arith.constant 0 : i32
    %c0_i32_1 = arith.constant 0 : i32
    return %c0_i32, %c0_i32_0 : i32, i32
  }
  func.func @transform_2(%arg0: i32) -> (i32, i32) {
    %c0_i32 = arith.constant 0 : i32
    %c0_i32_0 = arith.constant 0 : i32
    %c0_i32_1 = arith.constant 0 : i32
    return %c0_i32, %c0_i32_0 : i32, i32
  }
  func.func @transform_3(%arg0: i32) -> (i32, i32) {
    %c0_i32 = arith.constant 0 : i32
    %c0_i32_0 = arith.constant 0 : i32
    return %arg0, %c0_i32 : i32, i32
  }
  func.func @transform_4(%arg0: i32) -> (i32, i32) {
    %c0_i32 = arith.constant 0 : i32
    %c0_i32_0 = arith.constant 0 : i32
    %c0_i32_1 = arith.constant 0 : i32
    return %c0_i32, %c0_i32_0 : i32, i32
  }
  func.func @transform_5(%arg0: i32) -> (i32, i32) {
    %c0_i32 = arith.constant 0 : i32
    %c0_i32_0 = arith.constant 0 : i32
    %c0_i32_1 = arith.constant 0 : i32
    return %c0_i32, %c0_i32_0 : i32, i32
  }
  func.func @transform_6(%arg0: i32) -> (i32, i32) {
    %c0_i32 = arith.constant 0 : i32
    %c0_i32_0 = arith.constant 0 : i32
    return %arg0, %c0_i32 : i32, i32
  }
}

module attributes {stable_mosaic.version = 11 : i64} {
  func.func @kernel(%arg0: i32, %arg1: memref<16x128xbf16, #tpu.memory_space<vmem>>, %arg2: memref<1x128xf32, #tpu.memory_space<vmem>>, %arg3: memref<1x128xf32, #tpu.memory_space<vmem>>, %arg4: memref<128x256xbf16, #tpu.memory_space<vmem>>, %arg5: memref<1x256xf32, #tpu.memory_space<vmem>>, %arg6: memref<16x256xbf16, #tpu.memory_space<vmem>>) attributes {dimension_semantics = [#tpu.dimension_semantics<parallel>], iteration_bounds = array<i64: 2>, scalar_prefetch = 0 : i64, scratch_operands = 0 : i64, tpu.core_type = #tpu.core_type<tc>, window_params = [{transform_indices = @transform_0, window_bounds = array<i64: 16, 128>}, {pipeline_mode = #tpu.pipeline_mode<synchronous>, transform_indices = @transform_1, window_bounds = array<i64: 1, 128>}, {pipeline_mode = #tpu.pipeline_mode<synchronous>, transform_indices = @transform_2, window_bounds = array<i64: 1, 128>}, {pipeline_mode = #tpu.pipeline_mode<synchronous>, transform_indices = @transform_3, window_bounds = array<i64: 128, 256>}, {pipeline_mode = #tpu.pipeline_mode<synchronous>, transform_indices = @transform_4, window_bounds = array<i64: 1, 256>}, {transform_indices = @transform_5, window_bounds = array<i64: 16, 256>}]} {
    %c0 = arith.constant 0 : index
    %c0_0 = arith.constant 0 : index
    %0 = vector.load %arg1[%c0, %c0_0] : memref<16x128xbf16, #tpu.memory_space<vmem>>, vector<16x128xbf16>
    %1 = arith.extf %0 : vector<16x128xbf16> to vector<16x128xf32>
    %cst = arith.constant dense<0.000000e+00> : vector<16xf32>
    %2 = vector.multi_reduction <add>, %1, %cst [1] : vector<16x128xf32> to vector<16xf32>
    %3 = vector.shape_cast %2 : vector<16xf32> to vector<16x1xf32>
    %cst_1 = arith.constant 1.280000e+02 : f32
    %4 = vector.broadcast %cst_1 : f32 to vector<16x1xf32>
    %5 = arith.divf %3, %4 : vector<16x1xf32>
    %6 = vector.broadcast %5 : vector<16x1xf32> to vector<16x128xf32>
    %7 = arith.subf %1, %6 : vector<16x128xf32>
    %8 = arith.mulf %7, %7 : vector<16x128xf32>
    %cst_2 = arith.constant dense<0.000000e+00> : vector<16xf32>
    %9 = vector.multi_reduction <add>, %8, %cst_2 [1] : vector<16x128xf32> to vector<16xf32>
    %10 = vector.shape_cast %9 : vector<16xf32> to vector<16x1xf32>
    %cst_3 = arith.constant 1.280000e+02 : f32
    %11 = vector.broadcast %cst_3 : f32 to vector<16x1xf32>
    %12 = arith.divf %10, %11 : vector<16x1xf32>
    %cst_4 = arith.constant 9.99999997E-7 : f32
    %13 = vector.broadcast %cst_4 : f32 to vector<16x1xf32>
    %14 = arith.addf %12, %13 : vector<16x1xf32>
    %15 = math.rsqrt %14 : vector<16x1xf32>
    %16 = vector.broadcast %15 : vector<16x1xf32> to vector<16x128xf32>
    %17 = arith.mulf %7, %16 : vector<16x128xf32>
    %c0_5 = arith.constant 0 : index
    %c0_6 = arith.constant 0 : index
    %18 = vector.load %arg2[%c0_5, %c0_6] : memref<1x128xf32, #tpu.memory_space<vmem>>, vector<1x128xf32>
    %19 = vector.broadcast %18 : vector<1x128xf32> to vector<16x128xf32>
    %20 = arith.mulf %17, %19 : vector<16x128xf32>
    %c0_7 = arith.constant 0 : index
    %c0_8 = arith.constant 0 : index
    %21 = vector.load %arg3[%c0_7, %c0_8] : memref<1x128xf32, #tpu.memory_space<vmem>>, vector<1x128xf32>
    %22 = vector.broadcast %21 : vector<1x128xf32> to vector<16x128xf32>
    %23 = arith.addf %20, %22 : vector<16x128xf32>
    %24 = arith.truncf %23 : vector<16x128xf32> to vector<16x128xbf16>
    %c0_9 = arith.constant 0 : index
    %c0_10 = arith.constant 0 : index
    %25 = vector.load %arg4[%c0_9, %c0_10] : memref<128x256xbf16, #tpu.memory_space<vmem>>, vector<128x256xbf16>
    %cst_11 = arith.constant dense<0.000000e+00> : vector<16x256xf32>
    %26 = tpu.matmul %24, %25, %cst_11 {dimension_numbers = #tpu.dot_dimension_numbers<[1], [0], [0], [1], [0, 0, 1, 1], [], []>} : vector<16x128xbf16>, vector<128x256xbf16>, vector<16x256xf32> -> vector<16x256xf32>
    %c0_12 = arith.constant 0 : index
    %c0_13 = arith.constant 0 : index
    %27 = vector.load %arg5[%c0_12, %c0_13] : memref<1x256xf32, #tpu.memory_space<vmem>>, vector<1x256xf32>
    %28 = vector.broadcast %27 : vector<1x256xf32> to vector<16x256xf32>
    %29 = arith.addf %26, %28 : vector<16x256xf32>
    %cst_14 = arith.constant 5.000000e-01 : f32
    %30 = vector.broadcast %cst_14 : f32 to vector<16x256xf32>
    %31 = arith.mulf %30, %29 : vector<16x256xf32>
    %cst_15 = arith.constant 4.471500e-02 : f32
    %32 = vector.broadcast %cst_15 : f32 to vector<16x256xf32>
    %33 = arith.mulf %32, %29 : vector<16x256xf32>
    %34 = arith.mulf %33, %29 : vector<16x256xf32>
    %35 = arith.mulf %34, %29 : vector<16x256xf32>
    %36 = arith.addf %29, %35 : vector<16x256xf32>
    %cst_16 = arith.constant 0.797884583 : f32
    %37 = vector.broadcast %cst_16 : f32 to vector<16x256xf32>
    %38 = arith.mulf %37, %36 : vector<16x256xf32>
    %39 = math.tanh %38 : vector<16x256xf32>
    %cst_17 = arith.constant 1.000000e+00 : f32
    %40 = vector.broadcast %cst_17 : f32 to vector<16x256xf32>
    %41 = arith.addf %40, %39 : vector<16x256xf32>
    %42 = arith.mulf %31, %41 : vector<16x256xf32>
    %43 = arith.truncf %42 : vector<16x256xf32> to vector<16x256xbf16>
    %c0_18 = arith.constant 0 : index
    %c0_19 = arith.constant 0 : index
    %44 = vector.load %arg6[%c0_18, %c0_19] : memref<16x256xbf16, #tpu.memory_space<vmem>>, vector<16x256xbf16>
    tpu.vector_store %arg6[%c0_18, %c0_19], %43 {strides = array<i32>} : memref<16x256xbf16, #tpu.memory_space<vmem>>, vector<16x256xbf16>,
    return
  }
  func.func @transform_0(%arg0: i32) -> (i32, i32) {
    %c0_i32 = arith.constant 0 : i32
    %c0_i32_0 = arith.constant 0 : i32
    return %arg0, %c0_i32 : i32, i32
  }
  func.func @transform_1(%arg0: i32) -> (i32, i32) {
    %c0_i32 = arith.constant 0 : i32
    %c0_i32_0 = arith.constant 0 : i32
    %c0_i32_1 = arith.constant 0 : i32
    return %c0_i32, %c0_i32_0 : i32, i32
  }
  func.func @transform_2(%arg0: i32) -> (i32, i32) {
    %c0_i32 = arith.constant 0 : i32
    %c0_i32_0 = arith.constant 0 : i32
    %c0_i32_1 = arith.constant 0 : i32
    return %c0_i32, %c0_i32_0 : i32, i32
  }
  func.func @transform_3(%arg0: i32) -> (i32, i32) {
    %c0_i32 = arith.constant 0 : i32
    %c0_i32_0 = arith.constant 0 : i32
    %c0_i32_1 = arith.constant 0 : i32
    return %c0_i32, %c0_i32_0 : i32, i32
  }
  func.func @transform_4(%arg0: i32) -> (i32, i32) {
    %c0_i32 = arith.constant 0 : i32
    %c0_i32_0 = arith.constant 0 : i32
    %c0_i32_1 = arith.constant 0 : i32
    return %c0_i32, %c0_i32_0 : i32, i32
  }
  func.func @transform_5(%arg0: i32) -> (i32, i32) {
    %c0_i32 = arith.constant 0 : i32
    %c0_i32_0 = arith.constant 0 : i32
    return %arg0, %c0_i32 : i32, i32
  }
}

</mosaic_0001>

<bundles_post_ra>
// kernel: siglip_forward.14
= control target key start
LH: loop header
LB: loop body
LE: loop exit
PB: predicated region body
PF: predicated region fallthrough
CT: control target
= control target key end

     0   :  { %s500_s15 = smov 0   ;;  %s547_s0 = inlined_call_operand.vmem [shape: bf16[32,128], index: 0, kind: input, shape index: {}]   ;;  %s548_s1 = inlined_call_operand.vmem [shape: bf16[128,128], index: 1, kind: input, shape index: {}]   ;;  %s549_s2 = inlined_call_operand.vmem [shape: f32[1,128], index: 2, kind: input, shape index: {}]   ;;  %s550_s3 = inlined_call_operand.vmem [shape: bf16[32,128], index: 3, kind: input, shape index: {}]   ;;  %s551_s4 = inlined_call_operand.vmem [shape: bf16[32,128], index: 4, kind: output, shape index: {}]  }
   0x1 LB: > { %s391_s16 = sadd.s32 4294967295, %s473_s15   ;;  %p395_p0 = scmp.ge.s32.totalorder %s473_s15, 1  ;;  %s473_s15 = sphi %s500_s15, %s14_s15  }
   0x2   : > { %p174_p1 = scmp.lt.s32.totalorder %s473_s15, 3 }
   0x4   : > { %p175_p2 = pnand %p395_p0, %p174_p1 }
   0x5   : > { %s396_s25 = sshll.u32 (!%p175_p2), %s391_s16, 1 }
   0x6   : > { %178 = sbr.rel (%p175_p2) target bundleno = 184 (0xb8), region = 36  ;;  %p206_p3 = scmp.lt.s32.totalorder (!%p175_p2), %s396_s25, 3 }
   0xb   : > { %v448_v0 = vld [vmem:[%s548_s1 + $0x38] sm:$0xff]  ;;  %v447_v1 = vld [vmem:[%s548_s1 + $0x30] sm:$0xff]  ;;  %v446_v2 = vld [vmem:[%s548_s1 + $0x28] sm:$0xff]  ;;  %s553_s25 = smov (!%p206_p3, %s396_s25), 3 }
   0xc   : > { %299 = vmatpush.bf16.msra.mxu0 %v448_v0  ;;  %v445_v3 = vld [vmem:[%s548_s1 + $0x20] sm:$0xff]  ;;  %v444_v4 = vld [vmem:[%s548_s1 + $0x18] sm:$0xff]  ;;  %v443_v5 = vld [vmem:[%s548_s1 + $0x10] sm:$0xff]  ;;  %s397_s6 = sshll.u32 %s553_s25, 2 }
   0xd   : > { %v442_v6 = vld [vmem:[%s548_s1 + $0x8] sm:$0xff]  ;;  %v441_v7 = vld [vmem:[%s548_s1] sm:$0xff]  ;;  %s209_s11 = scalar_lea.vmem %s547_s0, %s397_s6  ;;  %s215_s14 = scalar_lea.vmem %s550_s3, %s397_s6 }
   0xe   : > { %v440_v8 = vld [vmem:[%s209_s11] sm:$0xff]  ;;  %s221_s20 = scalar_lea.vmem %s551_s4, %s397_s6 }
   0xf   : > { %v466_v10 = vld [vmem:[%s549_s2] ss:$0 sm:$0xff] }
  0x10   : > { %300 = vmatpush.bf16.msra.mxu0 %v447_v1  ;;  %v450_v11 = vld [vmem:[%s215_s14] sm:$0xff]  }
  0x11   : > { %v451_v13 = vunpack.c.l.bf16 %v450_v11  ;;  %v452_v14 = vunpack.c.h.bf16 %v450_v11 }
  0x14   : > { %301 = vmatpush.bf16.msra.mxu0 %v446_v2 }
  0x18   : > { %302 = vmatpush.bf16.msra.mxu0 %v445_v3 }
  0x1c   : > { %303 = vmatpush.bf16.msra.mxu0 %v444_v4 }
  0x20   : > { %304 = vmatpush.bf16.msra.mxu0 %v443_v5 }
  0x24   : > { %305 = vmatpush.bf16.msra.mxu0 %v442_v6 }
  0x28   : > { %306 = vmatpush.bf16.msra.mxu0 %v441_v7 }
  0x2b   : > { %307 = vmatmul.bf16.vlgmr.msra.gmra.mxu0 %v440_v8 }
  0xa8   : > { %v308_v9 = vpop.f32.mrf.mxu0 }
  0xa9   : > { %v309_v12 = vadd.f32 %v466_v10, %v308_v9 }
  0xab   : > { %v317_v17 = vadd.f32 %v451_v13, %v309_v12 }
  0xb0   : > { %v310_v15 = vpop.f32.mrf.mxu0 }
  0xb1   : > { %v311_v16 = vadd.f32 %v466_v10, %v310_v15 }
  0xb3   : > { %v318_v18 = vadd.f32 %v452_v14, %v311_v16 }
  0xb5   : > { %v456_v19 = vpack.c.bf16 %v318_v18, %v317_v17 }
  0xb7   : > { %457 = vst [vmem:[%s221_s20] sm:$0xff] %v456_v19  }
  0xb8 PF: > { %s14_s15 = sadd.s32 1, %s473_s15  }
  0xb9   : > { %p11_p4 = scmp.ge.s32.totalorder %s14_s15, 4  }
  0xbb   :  { %13 = sbr.rel (!%p11_p4) target bundleno = 1 (0x1), region = 69 }

// kernel: siglip_forward.11
= control target key start
LH: loop header
LB: loop body
LE: loop exit
PB: predicated region body
PF: predicated region fallthrough
CT: control target
= control target key end

     0   :  { %s821_s15 = smov 0   ;;  %s823_s16 = smov 0   ;;  %s919_s0 = inlined_call_operand.vmem [shape: bf16[32,256], index: 0, kind: input, shape index: {}]   ;;  %s920_s1 = inlined_call_operand.vmem [shape: bf16[256,128], index: 1, kind: input, shape index: {}]   ;;  %s921_s2 = inlined_call_operand.vmem [shape: bf16[16,128], index: 2, kind: input, shape index: {}]   ;;  %s922_s3 = inlined_call_operand.vmem [shape: f32[1,128], index: 3, kind: input, shape index: {}]   ;;  %s923_s4 = inlined_call_operand.vmem [shape: bf16[32,128], index: 4, kind: output, shape index: {}]  }
   0x1   :  { %s825_s17 = smov 0  }
   0x2 LB: > { %s26_s18 = sadd.s32 1, %s790_s16  ;;  %p656_p0 = scmp.ge.s32.totalorder %s794_s17, 1  ;;  %s794_s17 = sphi %s825_s17, %s14_s17   ;;  %s790_s16 = sphi %s823_s16, %s925_s16   ;;  %s786_s15 = sphi %s821_s15, %s924_s15  }
   0x3   : > { %p28_p1 = scmp.ge.s32.totalorder %s26_s18, 4  ;;  %p255_p2 = scmp.lt.s32.totalorder %s794_s17, 5 }
   0x5   : > { %s927_s18 = smov (%p28_p1, %s26_s18), 0  ;;  %p256_p3 = pnand %p656_p0, %p255_p2 }
   0x6   : > { %p309_p4 = scmp.lt.s32.totalorder (!%p256_p3), %s786_s15, 3  ;;  %s319_s8 = ssub.s32 (!%p256_p3), 0, %s786_s15 }
   0x7   : > { %259 = sbr.rel (%p256_p3) target bundleno = 179 (0xb3), region = 36  ;;  %s659_s10 = smin.u32 (!%p256_p3), %s786_s15, %s319_s8 }
   0x8   : > { %s321_s11 = sand.u32 (!%p256_p3), 1, %s659_s10   ;;  %p318_p5 = scmp.lt.s32.totalorder (!%p256_p3), %s786_s15, 0 }
   0x9   : > { %s322_s12 = ssub.s32 (!%p256_p3), 0, %s321_s11 }
   0xc   : > { %v738_v0 = vld [vmem:[%s920_s1 + $0x38] sm:$0xff]  ;;  %v737_v2 = vld [vmem:[%s920_s1 + $0x30] sm:$0xff]  ;;  %v736_v4 = vld [vmem:[%s920_s1 + $0x28] sm:$0xff]  ;;  %s867_s9 = scalar_select %p309_p4, %s786_s15, 3 }
   0xd   : > { %v746_v1 = vld [vmem:[%s920_s1 + $0x78] sm:$0xff]  ;;  %497 = vmatpush.bf16.msra.mxu0 %v738_v0  ;;  %v745_v3 = vld [vmem:[%s920_s1 + $0x70] sm:$0xff]  ;;  %v744_v5 = vld [vmem:[%s920_s1 + $0x68] sm:$0xff]  ;;  %s929_s12 = smov (!%p318_p5, %s322_s12), %s321_s11 }
   0xe   : > { %510 = vmatpush.bf16.msra.mxu1 %v746_v1  ;;  %v735_v6 = vld [vmem:[%s920_s1 + $0x20] sm:$0xff]  ;;  %v734_v8 = vld [vmem:[%s920_s1 + $0x18] sm:$0xff]  ;;  %s730_s14 = sshll.u32 %s867_s9, 3  ;;  %v733_v10 = vld [vmem:[%s920_s1 + $0x10] sm:$0xff]  ;;  %p661_p6 = scmp.lt.s32.totalorder %s929_s12, 0 }
   0xf   : > { %v743_v7 = vld [vmem:[%s920_s1 + $0x60] sm:$0xff]  ;;  %v742_v9 = vld [vmem:[%s920_s1 + $0x58] sm:$0xff]  ;;  %v741_v11 = vld [vmem:[%s920_s1 + $0x50] sm:$0xff]  ;;  %s313_s25 = scalar_lea.vmem %s919_s0, %s730_s14  ;;  %s328_s13 = sadd.s32 2, %s929_s12 }
  0x10   : > { %v732_v12 = vld [vmem:[%s920_s1 + $0x8] sm:$0xff]  ;;  %v359_v14 = vld [vmem:[%s313_s25] sm:$0xff]  ;;  %s931_s13 = smov (!%p661_p6, %s328_s13), %s929_s12  ;;  %s663_s23 = sshll.u32 %s867_s9, 2 }
  0x11   : > { %498 = vmatpush.bf16.msra.mxu0 %v737_v2  ;;  %v740_v13 = vld [vmem:[%s920_s1 + $0x48] sm:$0xff]  ;;  %v395_v15 = vunpack.c.l.b16 %v359_v14  ;;  %v396_v16 = vunpack.c.h.b16 %v359_v14  ;;  %v731_v17 = vld [vmem:[%s920_s1] sm:$0xff]  ;;  %p330_p7 = scmp.lt.s32.totalorder %s931_s13, 1  ;;  %s358_s26 = scalar_lea.vmem %s923_s4, %s663_s23 }
  0x12   : > { %511 = vmatpush.bf16.msra.mxu1 %v745_v3  ;;  %v739_v18 = vld [vmem:[%s920_s1 + $0x40] sm:$0xff] }
  0x13   : > { %v397_v19 = vpack.c.b16 %v395_v15, %v395_v15  ;;  %v398_v20 = vpack.c.b16 %v396_v16, %v396_v16  ;;  %s933_s13 = smov (!%p330_p7, %s931_s13), 1  ;;  %v771_v26 = vld [vmem:[%s922_s3] ss:$0 sm:$0xff] }
  0x14   : > { %s662_s14 = sshll.u32 %s933_s13, 2 }
  0x15   : > { %499 = vmatpush.bf16.msra.mxu0 %v736_v4  ;;  %s336_s21 = scalar_lea.vmem %s921_s2, %s662_s14 }
  0x16   : > { %512 = vmatpush.bf16.msra.mxu1 %v744_v5  ;;  %v392_v21 = vld [vmem:[%s336_s21] sm:$0xf] }
  0x17   : > { %v393_v22 = vunpack.c.l.bf16 %v392_v21 }
  0x19   : > { %500 = vmatpush.bf16.msra.mxu0 %v735_v6 }
  0x1a   : > { %513 = vmatpush.bf16.msra.mxu1 %v743_v7 }
  0x1d   : > { %501 = vmatpush.bf16.msra.mxu0 %v734_v8 }
  0x1e   : > { %514 = vmatpush.bf16.msra.mxu1 %v742_v9 }
  0x21   : > { %502 = vmatpush.bf16.msra.mxu0 %v733_v10 }
  0x22   : > { %515 = vmatpush.bf16.msra.mxu1 %v741_v11 }
  0x25   : > { %503 = vmatpush.bf16.msra.mxu0 %v732_v12 }
  0x26   : > { %516 = vmatpush.bf16.msra.mxu1 %v740_v13 }
  0x29   : > { %504 = vmatpush.bf16.msra.mxu0 %v731_v17 }
  0x2a   : > { %517 = vmatpush.bf16.msra.mxu1 %v739_v18 }
  0x2c   : > { %505 = vmatmul.bf16.vlgmr.msra.gmra.mxu0 %v397_v19 }
  0x2d   : > { %518 = vmatmul.bf16.vlgmr.msra.gmra.mxu1 %v398_v20 }
  0xa9   : > { %v506_v23 = vpop.f32.mrf.mxu0 }
  0xaa   : > { %v519_v24 = vpop.f32.mrf.mxu1  ;;  %v507_v25 = vadd.f32 %v506_v23, %v393_v22 }
  0xac   : > { %v520_v27 = vadd.f32 %v519_v24, %v507_v25 }
  0xae   : > { %v527_v28 = vadd.f32 %v771_v26, %v520_v27 }
  0xb0   : > { %v528_v29 = vpack.c.bf16 %v527_v28, %v527_v28 }
  0xb1   : > { %v508_v30 = vpop.f32.mrf.mxu0 }
  0xb2   : > { %v521_v31 = vpop.f32.mrf.mxu1  ;;  %529 = vst [vmem:[%s358_s26] sm:$0xf] %v528_v29 }
  0xb3 PF: > { %s14_s17 = sadd.s32 1, %s794_s17   ;;  %s924_s15 = smov %s790_s16 }
  0xb4   : > { %p11_p8 = scmp.ge.s32.totalorder %s14_s17, 6   ;;  %s925_s16 = smov %s927_s18 }
  0xb6   :  { %13 = sbr.rel (!%p11_p8) target bundleno = 2 (0x2), region = 75 }

// kernel: siglip_forward.12
= control target key start
LH: loop header
LB: loop body
LE: loop exit
PB: predicated region body
PF: predicated region fallthrough
CT: control target
= control target key end

     0   :  { %s762_s18 = smov 0   ;;  %s952_s0 = inlined_call_operand.vmem [shape: bf16[32,128], index: 0, kind: input, shape index: {}]   ;;  %s953_s1 = inlined_call_operand.vmem [shape: f32[1,128], index: 1, kind: input, shape index: {}]   ;;  %s954_s2 = inlined_call_operand.vmem [shape: f32[1,128], index: 2, kind: input, shape index: {}]   ;;  %s955_s3 = inlined_call_operand.vmem [shape: bf16[128,384], index: 3, kind: input, shape index: {}]   ;;  %s956_s4 = inlined_call_operand.vmem [shape: f32[1,384], index: 4, kind: input, shape index: {}]   ;;  %s957_s5 = inlined_call_operand.vmem [shape: bf16[32,384], index: 5, kind: output, shape index: {}]  }
   0x1 LB: > { %s570_s19 = sadd.s32 4294967295, %s729_s18   ;;  %p574_p0 = scmp.ge.s32.totalorder %s729_s18, 1  ;;  %s729_s18 = sphi %s762_s18, %s15_s18  }
   0x2   : > { %p188_p1 = scmp.lt.s32.totalorder %s729_s18, 3 }
   0x4   : > { %p189_p2 = pnand %p574_p0, %p188_p1 }
   0x5   : > { %s575_s20 = sshll.u32 (!%p189_p2), %s570_s19, 1 }
   0x6   : > { %192 = sbr.rel (%p189_p2) target bundleno = 439 (0x1b7), region = 40  ;;  %p218_p3 = scmp.lt.s32.totalorder (!%p189_p2), %s575_s20, 3 }
   0xb   : > { %s959_s20 = smov (!%p218_p3, %s575_s20), 3  ;;  %v731_v3 = vmov 128.0   ;;  %v665_v18 = vld [vmem:[%s955_s3 + $0xa8] sm:$0xf]  ;;  %v699_v19 = vld [vmem:[%s955_s3 + $0xb0] sm:$0xf0] }
   0xc   : > { %s576_s21 = sshll.u32 %s959_s20, 2  ;;  %717 = vrcp.f32 %v731_v3  ;;  %v698_v20 = vld [vmem:[%s955_s3 + $0xac] sm:$0xf]  ;;  %v666_v21 = vor.u32 %v699_v19, %v665_v18  ;;  %v667_v22 = vld [vmem:[%s955_s3 + $0xb4] sm:$0xf0]  ;;  %s705_s10 = smul.u32 12, %s959_s20 }
   0xd   : > { %s221_s24 = scalar_lea.vmem %s952_s0, %s576_s21  ;;  %v673_v23 = vld [vmem:[%s955_s3 + $0xb0] sm:$0xf]  ;;  %v700_v24 = vld [vmem:[%s955_s3 + $0xb8] sm:$0xf0]  ;;  %v670_v25 = vor.u32 %v698_v20, %v667_v22  ;;  %v695_v29 = vld [vmem:[%s955_s3 + $0x94] sm:$0xf] }
   0xe   : > { %v702_v0 = vld [vmem:[%s221_s24] sm:$0xff]   ;;  %v674_v26 = vor.u32 %v700_v24, %v673_v23  ;;  %462 = vmatpush.bf16.msra.mxu0 %v666_v21  ;;  %v653_v27 = vld [vmem:[%s955_s3 + $0x90] sm:$0xf]  ;;  %v696_v28 = vld [vmem:[%s955_s3 + $0x98] sm:$0xf0]  ;;  %s228_s13 = scalar_lea.vmem %s957_s5, %s705_s10 }
   0xf   : > { %v703_v1 = vunpack.c.l.bf16 %v702_v0  ;;  %v704_v2 = vunpack.c.h.bf16 %v702_v0  ;;  %476 = vmatpush.bf16.msra.mxu1 %v670_v25  ;;  %v654_v30 = vor.u32 %v696_v28, %v653_v27  ;;  %v655_v31 = vld [vmem:[%s955_s3 + $0x9c] sm:$0xf0]  ;;  %v661_v32 = vld [vmem:[%s955_s3 + $0x98] sm:$0xf]  ;;  %v697_v33 = vld [vmem:[%s955_s3 + $0xa0] sm:$0xf0] }
  0x10   : > { %490 = vmatpush.bf16.msra.mxu2 %v674_v26  ;;  %v658_v34 = vor.u32 %v695_v29, %v655_v31  ;;  %v662_v35 = vor.u32 %v697_v33, %v661_v32  ;;  %v641_v36 = vld [vmem:[%s955_s3 + $0x78] sm:$0xf]  ;;  %v693_v37 = vld [vmem:[%s955_s3 + $0x80] sm:$0xf0]  ;;  %v692_v38 = vld [vmem:[%s955_s3 + $0x7c] sm:$0xf] }
  0x11   : > { %234 = vadd.xlane.f32.xlu0 %v703_v1  ;;  %v642_v39 = vor.u32 %v693_v37, %v641_v36  ;;  %v643_v40 = vld [vmem:[%s955_s3 + $0x84] sm:$0xf0]  ;;  %v649_v41 = vld [vmem:[%s955_s3 + $0x80] sm:$0xf]  ;;  %v694_v42 = vld [vmem:[%s955_s3 + $0x88] sm:$0xf0] }
  0x12   : > { %v718_v4 = vpop.eup %717  ;;  %463 = vmatpush.bf16.msra.mxu0 %v654_v30  ;;  %v646_v43 = vor.u32 %v692_v38, %v643_v40  ;;  %v650_v44 = vor.u32 %v694_v42, %v649_v41  ;;  %v629_v45 = vld [vmem:[%s955_s3 + $0x60] sm:$0xf]  ;;  %v690_v46 = vld [vmem:[%s955_s3 + $0x68] sm:$0xf0]  ;;  %v689_v47 = vld [vmem:[%s955_s3 + $0x64] sm:$0xf] }
  0x13   : > { %v239_v5 = vmul.f32 128.0, %v718_v4  ;;  %vm243_vm0 = vweird.f32 %v718_v4  ;;  %477 = vmatpush.bf16.msra.mxu1 %v658_v34  ;;  %v630_v48 = vor.u32 %v690_v46, %v629_v45  ;;  %v631_v49 = vld [vmem:[%s955_s3 + $0x6c] sm:$0xf0]  ;;  %v637_v50 = vld [vmem:[%s955_s3 + $0x68] sm:$0xf] }
  0x14   : > { %491 = vmatpush.bf16.msra.mxu2 %v662_v35  ;;  %v691_v51 = vld [vmem:[%s955_s3 + $0x70] sm:$0xf0]  ;;  %v634_v52 = vor.u32 %v689_v47, %v631_v49  ;;  %v617_v54 = vld [vmem:[%s955_s3 + $0x48] sm:$0xf]  ;;  %v686_v56 = vld [vmem:[%s955_s3 + $0x4c] sm:$0xf] }
  0x15   : > { %v240_v6 = vsub.f32 1.0, %v239_v5  ;;  %v638_v53 = vor.u32 %v691_v51, %v637_v50  ;;  %v687_v55 = vld [vmem:[%s955_s3 + $0x50] sm:$0xf0]  ;;  %v619_v58 = vld [vmem:[%s955_s3 + $0x54] sm:$0xf0] }
  0x16   : > { %464 = vmatpush.bf16.msra.mxu0 %v642_v39  ;;  %v618_v57 = vor.u32 %v687_v55, %v617_v54  ;;  %v625_v59 = vld [vmem:[%s955_s3 + $0x50] sm:$0xf]  ;;  %v688_v60 = vld [vmem:[%s955_s3 + $0x58] sm:$0xf0]  ;;  %v622_v61 = vor.u32 %v686_v56, %v619_v58  ;;  %v607_v3 = vld [vmem:[%s955_s3 + $0x3c] sm:$0xf0] }
  0x17   : > { %v241_v7 = vmul.f32 %v718_v4, %v240_v6  ;;  %478 = vmatpush.bf16.msra.mxu1 %v646_v43  ;;  %v626_v62 = vor.u32 %v688_v60, %v625_v59  ;;  %v605_v63 = vld [vmem:[%s955_s3 + $0x30] sm:$0xf]  ;;  %v684_v0 = vld [vmem:[%s955_s3 + $0x38] sm:$0xf0]  ;;  %v685_v5 = vld [vmem:[%s955_s3 + $0x40] sm:$0xf0] }
  0x18   : > { %492 = vmatpush.bf16.msra.mxu2 %v650_v44  ;;  %v581_v20 = vld [vmem:[%s955_s3] sm:$0xf]  ;;  %v678_v21 = vld [vmem:[%s955_s3 + $0x8] sm:$0xf0]  ;;  %v677_v22 = vld [vmem:[%s955_s3 + $0x4] sm:$0xf] }
  0x19   : > { %236 = vadd.xlane.f32.xlu0 %v704_v2  ;;  %v242_v8 = vadd.f32 %v718_v4, %v241_v7  ;;  %v582_v24 = vor.u32 %v678_v21, %v581_v20  ;;  %v583_v25 = vld [vmem:[%s955_s3 + $0xc] sm:$0xf0]  ;;  %v589_v26 = vld [vmem:[%s955_s3 + $0x8] sm:$0xf]  ;;  %v679_v27 = vld [vmem:[%s955_s3 + $0x10] sm:$0xf0] }
  0x1a   : > { %465 = vmatpush.bf16.msra.mxu0 %v630_v48  ;;  %v586_v29 = vor.u32 %v677_v22, %v583_v25  ;;  %v590_v30 = vor.u32 %v679_v27, %v589_v26  ;;  %v715_v47 = vld [vmem:[%s953_s1] ss:$0 sm:$0xff] }
  0x1b   : > { %v776_v9 = vsel %vm243_vm0, %v718_v4, %v242_v8  ;;  %479 = vmatpush.bf16.msra.mxu1 %v634_v52  ;;  %v613_v4 = vld [vmem:[%s955_s3 + $0x38] sm:$0xf]  ;;  %v716_v52 = vld [vmem:[%s954_s2] ss:$0 sm:$0xff] }
  0x1c   : > { %493 = vmatpush.bf16.msra.mxu2 %v638_v53  ;;  %v614_v7 = vor.u32 %v685_v5, %v613_v4  ;;  %v593_v8 = vld [vmem:[%s955_s3 + $0x18] sm:$0xf]  ;;  %v326_v56 = vld [vmem:[%s956_s4] sm:$0x7] }
  0x1d   : > { %v329_v58 = vperm.slane %v326_v56, 1 }
  0x1e   : > { %466 = vmatpush.bf16.msra.mxu0 %v618_v57  ;;  %v328_v57 = vperm.slane %v326_v56, 0 }
  0x1f   : > { %480 = vmatpush.bf16.msra.mxu1 %v622_v61 }
  0x20   : > { %494 = vmatpush.bf16.msra.mxu2 %v626_v62 }
  0x24   : > { %495 = vmatpush.bf16.msra.mxu2 %v614_v7 }
  0x84   : > { %v235_v10 = vpop.xlane.xlu0 %234 }
  0x85   : > { %v245_v11 = vmul.f32 %v776_v9, %v235_v10  ;;  %v681_v10 = vld [vmem:[%s955_s3 + $0x20] sm:$0xf0] }
  0x87   : > { %v779_v12 = vsub.f32 %v703_v1, %v245_v11  ;;  %v683_v1 = vld [vmem:[%s955_s3 + $0x34] sm:$0xf]  ;;  %v680_v11 = vld [vmem:[%s955_s3 + $0x1c] sm:$0xf] }
  0x88   : > { %v610_v6 = vor.u32 %v683_v1, %v607_v3 }
  0x89   : > { %v249_v13 = vmul.f32 %v779_v12, %v779_v12 }
  0x8a   : > { %481 = vmatpush.bf16.msra.mxu1 %v610_v6 }
  0x8b   : > { %251 = vadd.xlane.f32.xlu1 %v249_v13  ;;  %v594_v13 = vor.u32 %v681_v10, %v593_v8 }
  0x8c   : > { %v237_v14 = vpop.xlane.xlu0 %236 }
  0x8d   : > { %v246_v15 = vmul.f32 %v776_v9, %v237_v14  ;;  %v595_v14 = vld [vmem:[%s955_s3 + $0x24] sm:$0xf0] }
  0x8e   : > { %v598_v18 = vor.u32 %v680_v11, %v595_v14 }
  0x8f   : > { %v784_v16 = vsub.f32 %v704_v2, %v246_v15  ;;  %v606_v2 = vor.u32 %v684_v0, %v605_v63  ;;  %v601_v15 = vld [vmem:[%s955_s3 + $0x20] sm:$0xf]  ;;  %v330_v63 = vperm.slane %v326_v56, 2 }
  0x90   : > { %482 = vmatpush.bf16.msra.mxu1 %v598_v18 }
  0x91   : > { %v250_v17 = vmul.f32 %v784_v16, %v784_v16  ;;  %467 = vmatpush.bf16.msra.mxu0 %v606_v2 }
  0x93   : > { %253 = vadd.xlane.f32.xlu1 %v250_v17  ;;  %v682_v17 = vld [vmem:[%s955_s3 + $0x28] sm:$0xf0] }
  0x94   : > { %v602_v19 = vor.u32 %v682_v17, %v601_v15  ;;  %483 = vmatpush.bf16.msra.mxu1 %v586_v29 }
  0x95   : > { %468 = vmatpush.bf16.msra.mxu0 %v594_v13 }
  0x96   : > { %496 = vmatpush.bf16.msra.mxu2 %v602_v19 }
  0x99   : > { %469 = vmatpush.bf16.msra.mxu0 %v582_v24 }
  0x9a   : > { %497 = vmatpush.bf16.msra.mxu2 %v590_v30 }
  0xfe   : > { %v252_v23 = vpop.xlane.xlu1 %251 }
  0xff   : > { %v255_v28 = vmul.f32 %v252_v23, %v776_v9 }
 0x101   : > { %v257_v31 = vadd.f32 1e-06, %v255_v28 }
 0x103   : > { %719 = vrsqrt.f32 %v257_v31  ;;  %vm265_vm2 = vweird.f32 %v257_v31 }
 0x106   : > { %v254_v32 = vpop.xlane.xlu1 %253 }
 0x107   : > { %v256_v33 = vmul.f32 %v254_v32, %v776_v9 }
 0x109   : > { %v720_v34 = vpop.eup %719  ;;  %v258_v35 = vadd.f32 1e-06, %v256_v33 }
 0x10a   : > { %v260_v36 = vmul.f32 %v720_v34, %v257_v31  ;;  %vm266_vm1 = vweird.f32 %v720_v34 }
 0x10b   : > { %721 = vrsqrt.f32 %v258_v35  ;;  %vm267_vm3 = vmor %vm265_vm2, %vm266_vm1  ;;  %vm275_vm5 = vweird.f32 %v258_v35 }
 0x10c   : > { %v261_v37 = vmul.f32 %v720_v34, %v260_v36 }
 0x10e   : > { %v262_v38 = vmul.f32 0.5, %v261_v37 }
 0x110   : > { %v263_v39 = vsub.f32 1.5, %v262_v38 }
 0x111   : > { %v722_v40 = vpop.eup %721 }
 0x112   : > { %v264_v41 = vmul.f32 %v720_v34, %v263_v39  ;;  %v270_v42 = vmul.f32 %v722_v40, %v258_v35  ;;  %vm276_vm4 = vweird.f32 %v722_v40 }
 0x113   : > { %vm277_vm6 = vmor %vm275_vm5, %vm276_vm4 }
 0x114   : > { %v271_v43 = vmul.f32 %v722_v40, %v270_v42  ;;  %v268_v44 = vsel %vm267_vm3, %v720_v34, %v264_v41 }
 0x115   : > { %v279_v9 = vmul.f32 %v268_v44, %v779_v12 }
 0x116   : > { %v272_v45 = vmul.f32 0.5, %v271_v43 }
 0x117   : > { %v285_v51 = vmul.f32 %v715_v47, %v279_v9 }
 0x118   : > { %v273_v46 = vsub.f32 1.5, %v272_v45 }
 0x119   : > { %v291_v54 = vadd.f32 %v716_v52, %v285_v51 }
 0x11a   : > { %v274_v48 = vmul.f32 %v722_v40, %v273_v46 }
 0x11c   : > { %v278_v49 = vsel %vm277_vm6, %v722_v40, %v274_v48 }
 0x11d   : > { %v280_v50 = vmul.f32 %v278_v49, %v784_v16 }
 0x11f   : > { %v286_v53 = vmul.f32 %v715_v47, %v280_v50 }
 0x121   : > { %v292_v55 = vadd.f32 %v716_v52, %v286_v53 }
 0x123   : > { %v293_v12 = vpack.c.bf16 %v292_v55, %v291_v54 }
 0x125   : > { %470 = vmatmul.bf16.vlgmr.msra.gmra.mxu0 %v293_v12  ;;  %484 = vmatmul.bf16.vlgmr.msra.gmra.mxu1 %v293_v12 }
 0x126   : > { %498 = vmatmul.bf16.vlgmr.msra.gmra.mxu2 %v293_v12 }
 0x1a2   : > { %v471_v16 = vpop.f32.mrf.mxu0  ;;  %v485_v59 = vpop.f32.mrf.mxu1 }
 0x1a3   : > { %v472_v60 = vadd.f32 %v471_v16, %v328_v57  ;;  %v486_v61 = vadd.f32 %v485_v59, %v329_v58 }
 0x1a5   : > { %v504_v62 = vpack.c.bf16 %v486_v61, %v472_v60 }
 0x1a7   : > { %508 = vst [vmem:[%s228_s13] sm:$0xff] %v504_v62 }
 0x1a9   : > { %v499_v0 = vpop.f32.mrf.mxu2 }
 0x1aa   : > { %v500_v1 = vadd.f32 %v499_v0, %v330_v63  ;;  %v473_v2 = vpop.f32.mrf.mxu0  ;;  %v487_v3 = vpop.f32.mrf.mxu1 }
 0x1ab   : > { %v474_v4 = vadd.f32 %v473_v2, %v328_v57  ;;  %v488_v5 = vadd.f32 %v487_v3, %v329_v58 }
 0x1ac   : > { %v505_v6 = vpack.c.bf16 %v500_v1, %v500_v1 }
 0x1ad   : > { %v506_v7 = vpack.c.bf16 %v488_v5, %v474_v4 }
 0x1ae   : > { %509 = vst [vmem:[%s228_s13 + $0x8] sm:$0xf] %v505_v6 }
 0x1af   : > { %510 = vst [vmem:[%s228_s13 + $0xc] sm:$0xff] %v506_v7 }
 0x1b1   : > { %v501_v8 = vpop.f32.mrf.mxu2 }
 0x1b2   : > { %v502_v10 = vadd.f32 %v501_v8, %v330_v63 }
 0x1b4   : > { %v507_v11 = vpack.c.bf16 %v502_v10, %v502_v10 }
 0x1b6   : > { %511 = vst [vmem:[%s228_s13 + $0x14] sm:$0xf] %v507_v11 }
 0x1b7 PF: > { %s15_s18 = sadd.s32 1, %s729_s18  }
 0x1b8   : > { %p12_p4 = scmp.ge.s32.totalorder %s15_s18, 4  }
 0x1ba   :  { %14 = sbr.rel (!%p12_p4) target bundleno = 1 (0x1), region = 70 }

// kernel: siglip_forward.13
= control target key start
LH: loop header
LB: loop body
LE: loop exit
PB: predicated region body
PF: predicated region fallthrough
CT: control target
= control target key end

     0   :  { %s919_s12 = smov 0   ;;  %s921_s13 = smov 0   ;;  %s1071_s0 = inlined_call_operand.vmem [shape: bf16[2,16,384], index: 0, kind: input, shape index: {}, may-alias: {0,1,2}]   ;;  %s1072_s1 = inlined_call_operand.vmem [shape: bf16[2,16,384], index: 1, kind: input, shape index: {}, may-alias: {0,1,2}]   ;;  %s1073_s2 = inlined_call_operand.vmem [shape: bf16[2,16,384], index: 2, kind: input, shape index: {}, may-alias: {0,1,2}]   ;;  %s1074_s3 = inlined_call_operand.vmem [shape: bf16[2,16,128], index: 3, kind: output, shape index: {}]  }
   0x1   :  { %s923_s14 = smov 0   ;;  %s925_s15 = smov 0  }
   0x2   :  { %s927_s16 = smov 0   ;;  %s929_s17 = smov 0  }
   0x3   :  { %s931_s18 = smov 0  }
   0x4 LB: > { %s22_s19 = sadd.s32 1, %s886_s16  ;;  %s25_s20 = sadd.s32 1, %s890_s17  ;;  %s894_s18 = sphi %s931_s18, %s13_s18   ;;  %s890_s17 = sphi %s929_s17, %s1081_s17   ;;  %s886_s16 = sphi %s927_s16, %s1080_s16   ;;  %s882_s15 = sphi %s925_s15, %s1079_s15   ;;  %s878_s14 = sphi %s923_s14, %s1078_s14   ;;  %s874_s13 = sphi %s921_s13, %s1077_s13   ;;  %s870_s12 = sphi %s919_s12, %s1076_s12  }
   0x5   : > { %p23_p0 = scmp.ge.s32.totalorder %s22_s19, 2  ;;  %p67_p1 = scmp.ne.s32.totalorder %s874_s13, %s870_s12 }
   0x6   : > { %p68_p2 = scmp.eq.s32.totalorder %s894_s18, 0  ;;  %s60_s23 = sadd.s32 1, %s874_s13 }
   0x7   : > { %s1083_s19 = smov (%p23_p0, %s22_s19), 0  ;;  %s1085_s20 = smov (!%p23_p0, %s25_s20), %s890_s17 }
   0x8   : > { %p962_p3 = por %p68_p2, %p67_p1  ;;  %p27_p4 = scmp.ge.s32.totalorder %s1085_s20, 2 }
   0x9   : > { %p728_p6 = scmp.ge.s32.totalorder %s894_s18, 4 }
   0xa   : > { %s1087_s20 = smov (%p27_p4, %s1085_s20), 0 }
   0xb   : > { %s57_s22 = ssub.s32 %s890_s17, %s1087_s20  ;;  %147 = sbr.rel (%p728_p6) target bundleno = 30 (0x1e), region = 16 }
   0xc   : > { %p58_p5 = scmp.eq.s32.totalorder %s57_s22, 0 }
   0xe   : > { %s972_s24 = scalar_select %p58_p5, %s874_s13, %s60_s23  }
  0x10   : > { %162 = sbr.rel (!%p962_p3) target bundleno = 23 (0x17), region = 24  ;;  %s164_s25 = sand.u32 (%p962_p3), 1, %s874_s13  }
  0x11   : > { %s730_s26 = smul.u32 (%p962_p3), 24, %s890_s17  ;;  %s729_s27 = sshll.u32 (%p962_p3), %s164_s25, 3 }
  0x12   : > { %s166_s4 = scalar_lea.vmem (%p962_p3), [#allocation2], %s729_s27 }
  0x13   : > { %s632_s30 = scalar_lea.vmem (%p962_p3), %s1072_s1, %s730_s26 }
  0x14   : > { %v731_v0 = vld [vmem:[%s632_s30 + $0x4] sm:$0xf] (%p962_p3)  ;;  %v732_v1 = vld [vmem:[%s632_s30 + $0x10] sm:$0xf] (%p962_p3) }
  0x15   : > { %188 = vst [vmem:[%s166_s4] sm:$0xf] %v731_v0 }
  0x16   : > { %190 = vst [vmem:[%s166_s4 + $0x4] sm:$0xf] %v732_v1 }
  0x17 PF: > { %218 = sbr.rel (!%p962_p3) target bundleno = 30 (0x1e), region = 65  ;;  %s220_s5 = sand.u32 (%p962_p3), 1, %s874_s13  }
  0x18   : > { %s734_s6 = smul.u32 (%p962_p3), 24, %s890_s17  ;;  %s733_s7 = sshll.u32 (%p962_p3), %s220_s5, 3 }
  0x19   : > { %s222_s11 = scalar_lea.vmem (%p962_p3), [#allocation3], %s733_s7 }
  0x1a   : > { %s638_s10 = scalar_lea.vmem (%p962_p3), %s1073_s2, %s734_s6 }
  0x1b   : > { %v735_v2 = vld [vmem:[%s638_s10 + $0x8] sm:$0xf] (%p962_p3)  ;;  %v736_v3 = vld [vmem:[%s638_s10 + $0x14] sm:$0xf] (%p962_p3) }
  0x1c   : > { %244 = vst [vmem:[%s222_s11] sm:$0xf] %v735_v2 }
  0x1d   : > { %246 = vst [vmem:[%s222_s11 + $0x4] sm:$0xf] %v736_v3 }
  0x1e PF: > { %p737_p7 = scmp.ge.s32.totalorder %s894_s18, 1  ;;  %p273_p8 = scmp.lt.s32.totalorder %s894_s18, 5 }
  0x20   : > { %p274_p9 = pnand %p737_p7, %p273_p8 }
  0x21   : > { %s280_s21 = sand.u32 (!%p274_p9), 1, %s870_s12   ;;  %p326_p10 = scmp.lt.s32.totalorder (!%p274_p9), %s882_s15, 1 }
  0x22   : > { %277 = sbr.rel (%p274_p9) target bundleno = 855 (0x357), region = 106  ;;  %s993_s22 = sshll.u32 (!%p274_p9), %s280_s21, 3 }
  0x23   : > { %p328_p11 = scmp.lt.s32.totalorder (!%p274_p9), %s878_s14, 1  ;;  %s282_s23 = scalar_lea.vmem (!%p274_p9), [#allocation2], %s993_s22 }
  0x24   : > { %s896_s12 = smov (!%p274_p9), 32   ;;  %s897_s5 = smov (!%p274_p9), 96  }
  0x25   : > { %s898_s6 = smov (!%p274_p9), 64   ;;  %s289_s7 = scalar_lea.vmem (!%p274_p9), [#allocation3], %s993_s22 }
  0x27   : > { %vm357_vm0 = vcmask 261120   ;;  %v761_v4 = vld [vmem:[%s282_s23] sm:$0xff]  ;;  %s1089_s15 = smov (!%p326_p10, %s882_s15), 1  ;;  %s1091_s14 = smov (!%p328_p11, %s878_s14), 1  ;;  %vm377_vm1 = vcmask 130048   ;;  %v762_v20 = vld [vmem:[%s289_s7] sm:$0xff] }
  0x28   : > { %v362_v5 = vsel %vm357_vm0, %v761_v4, 0  ;;  %s764_s25 = smul.u32 6, %s1089_s15  ;;  %525 = vrot.lane.b32.xlu2 %v761_v4, %s896_s12  ;;  %404 = vmatpush.bf16.msra.mxu1 %v762_v20  ;;  %s741_s8 = sshll.u32 %s1089_s15, 1  ;;  %vm590_vm2 = vcmask 523264   ;;  %vm592_vm3 = vcmask 785408  }
  0x29   : > { %371 = vmatpush.bf16.xpose.msra.mxu0 %v362_v5  ;;  %s763_s26 = smul.u32 3, %s1091_s14  ;;  %s340_s9 = sadd.s32 %s741_s8, %s1091_s14 }
  0x2a   : > { %s742_s10 = sshll.u32 %s340_s9, 2 }
  0x2b   : > { %s332_s27 = sadd.s32 %s764_s25, %s763_s26  ;;  %s342_s22 = scalar_lea.vmem %s1074_s3, %s742_s10 }
  0x2c   : > { %s740_s28 = sshll.u32 %s332_s27, 2 }
  0x2d   : > { %s334_s4 = scalar_lea.vmem %s1071_s0, %s740_s28 }
  0x2e   : > { %v344_v6 = vld [vmem:[%s334_s4] sm:$0xf] }
  0x2f   : > { %v345_v7 = vunpack.c.l.bf16 %v344_v6 }
  0x31   : > { %v346_v8 = vmul.f32 0.17677669, %v345_v7 }
  0x33   : > { %v347_v9 = vpack.c.bf16 %v346_v8, %v346_v8 }
  0x35   : > { %747 = vmatmul.msk.bf16.vlgmr.msra.gmra.mxu0 %vm357_vm0, %v347_v9  ;;  %v413_v10 = vunpack.c.l.b16 %v347_v9 }
  0x37   : > { %v414_v11 = vpack.c.b16 %v413_v10, %v413_v10 }
  0x39   : > { %415 = vrot.lane.b32.xlu1 %v414_v11, %s897_s5  ;;  %469 = vrot.lane.b32.xlu2 %v414_v11, %s898_s6 }
  0x41   : > { %471 = vrot.lane.b32.xlu1 %v761_v4, %s898_s6 }
  0x49   : > { %523 = vrot.lane.b32.xlu1 %v414_v11, %s896_s12 }
  0x51   : > { %448 = vrot.lane.b32.xlu1 %v762_v20, %s897_s5 }
  0x82   : > { %v526_v12 = vpop.permute.xlu2 %525 }
  0x83   : > { %v531_v13 = vsel %vm357_vm0, %v526_v12, 0 }
  0x84   : > { %540 = vmatpush.bf16.xpose.msrb.mxu0 %v531_v13 }
  0x93   : > { %v470_v32 = vpop.permute.xlu2 %469 }
  0xab   : > { %v416_v14 = vpop.permute.xlu1 %415 }
  0xb2   : > { %v373_v15 = vpop.f32.mrf.mxu0 }
  0xb3   : > { %v378_v16 = vsel %vm377_vm1, %v373_v15, -inf  ;;  %v472_v17 = vpop.permute.xlu1 %471 }
  0xb4   : > { %379 = vmax.xlane.f32.xlu0 %v378_v16  ;;  %v477_v21 = vsel %vm357_vm0, %v472_v17, 0 }
  0xb5   : > { %486 = vmatpush.bf16.xpose.msrb.mxu1 %v477_v21 }
  0xba   : > { %v375_v18 = vpop.f32.mrf.mxu0 }
  0xbb   : > { %v524_v19 = vpop.permute.xlu1 %523 }
  0xbc   : > { %757 = vmatmul.msk.bf16.vlgmr.msrb.gmra.mxu0 %vm357_vm0, %v524_v19 }
  0xc3   : > { %v449_v34 = vpop.permute.xlu1 %448 }
  0xc4   : > { %461 = vmatpush.bf16.msra.mxu3 %v449_v34 }
  0xc8   : > { %417 = vrot.lane.b32.xlu0 %v761_v4, %s897_s5 }
 0x127   : > { %v380_v22 = vpop.xlane.xlu0 %379 }
 0x128   : > { %v381_v23 = vsub.f32 %v373_v15, %v380_v22 }
 0x12a   : > { %v382_v24 = vmul.f32 1.442695, %v381_v23 }
 0x12c   : > { %824 = vpow2.f32 %v382_v24 }
 0x132   : > { %v825_v25 = vpop.eup %824 }
 0x133   : > { %v387_v26 = vpack.c.bf16 %v825_v25, %v825_v25  ;;  %v384_v42 = vsel %vm377_vm1, %v825_v25, 0.0 }
 0x135   : > { %752 = vmatmul.msk.bf16.vlgmr.msra.gmra.mxu1 %vm377_vm1, %v387_v26 }
 0x139   : > { %v542_v27 = vpop.f32.mrf.mxu0 }
 0x13a   : > { %v418_v28 = vpop.permute.xlu0 %417  ;;  %v546_v29 = vsel %vm377_vm1, %v542_v27, -inf }
 0x13b   : > { %v423_v30 = vsel %vm357_vm0, %v418_v28, 0  ;;  %547 = vmax.xlane.f32.xlu1 %v546_v29 }
 0x13c   : > { %432 = vmatpush.bf16.xpose.msra.mxu2 %v423_v30 }
 0x141   : > { %v544_v31 = vpop.f32.mrf.mxu0 }
 0x143   : > { %753 = vmatmul.msk.bf16.vlgmr.msra.gmra.mxu2 %vm357_vm0, %v416_v14 }
 0x145   : > { %755 = vmatmul.msk.bf16.vlgmr.msrb.gmra.mxu1 %vm357_vm0, %v470_v32 }
 0x1ae   : > { %v548_v44 = vpop.xlane.xlu1 %547 }
 0x1af   : > { %v549_v47 = vsub.f32 %v542_v27, %v548_v44 }
 0x1b1   : > { %v550_v51 = vmul.f32 1.442695, %v549_v47 }
 0x1b2   : > { %v1027_v33 = vpop.f32.mrf.mxu1 }
 0x1ba   : > { %v408_v35 = vpop.f32.mrf.mxu1 }
 0x1c2   : > { %v488_v36 = vpop.f32.mrf.mxu1 }
 0x1c3   : > { %v492_v37 = vsel %vm377_vm1, %v488_v36, -inf }
 0x1c4   : > { %493 = vmax.xlane.f32.xlu0 %v492_v37 }
 0x1c6   : > { %v434_v38 = vpop.f32.mrf.mxu2 }
 0x1c7   : > { %v438_v39 = vsel %vm377_vm1, %v434_v38, -inf }
 0x1c8   : > { %439 = vmax.xlane.f32.xlu2 %v438_v39 }
 0x1ca   : > { %v490_v40 = vpop.f32.mrf.mxu1 }
 0x1ce   : > { %v436_v41 = vpop.f32.mrf.mxu2 }
 0x1d8   : > { %556 = vrot.lane.b32.xlu0 %v762_v20, %s896_s12 }
 0x1e0   : > { %502 = vrot.lane.b32.xlu2 %v762_v20, %s898_s6 }
 0x202   : > { %385 = vadd.xlane.f32.xlu0 %v384_v42 }
 0x237   : > { %v494_v43 = vpop.xlane.xlu0 %493 }
 0x238   : > { %v495_v45 = vsub.f32 %v488_v36, %v494_v43 }
 0x23a   : > { %v496_v46 = vmul.f32 1.442695, %v495_v45 }
 0x23b   : > { %v440_v48 = vpop.xlane.xlu2 %439 }
 0x23c   : > { %826 = vpow2.f32 %v496_v46  ;;  %v441_v49 = vsub.f32 %v434_v38, %v440_v48 }
 0x23e   : > { %v442_v50 = vmul.f32 1.442695, %v441_v49 }
 0x240   : > { %828 = vpow2.f32 %v442_v50 }
 0x241   : > { %830 = vpow2.f32 %v550_v51 }
 0x242   : > { %v827_v52 = vpop.eup %826 }
 0x243   : > { %v498_v53 = vsel %vm377_vm1, %v827_v52, 0.0  ;;  %v503_v54 = vpop.permute.xlu2 %502  ;;  %v501_v62 = vpack.c.bf16 %v827_v52, %v827_v52 }
 0x244   : > { %499 = vadd.xlane.f32.xlu2 %v498_v53  ;;  %515 = vmatpush.bf16.msrb.mxu3 %v503_v54 }
 0x246   : > { %v829_v55 = vpop.eup %828 }
 0x247   : > { %v444_v56 = vsel %vm377_vm1, %v829_v55, 0.0  ;;  %v447_v57 = vpack.c.bf16 %v829_v55, %v829_v55  ;;  %v831_v58 = vpop.eup %830 }
 0x248   : > { %445 = vadd.xlane.f32.xlu1 %v444_v56  ;;  %v555_v60 = vpack.c.bf16 %v831_v58, %v831_v58  ;;  %v552_v61 = vsel %vm377_vm1, %v831_v58, 0.0 }
 0x249   : > { %754 = vmatmul.msk.bf16.vlgmr.msra.gmra.mxu3 %vm377_vm1, %v447_v57 }
 0x24a   : > { %v557_v59 = vpop.permute.xlu0 %556 }
 0x24b   : > { %569 = vmatpush.bf16.msrb.mxu2 %v557_v59 }
 0x24e   : > { %758 = vmatmul.msk.bf16.vlgmr.msrb.gmra.mxu2 %vm377_vm1, %v555_v60 }
 0x250   : > { %553 = vadd.xlane.f32.xlu1 %v552_v61 }
 0x259   : > { %756 = vmatmul.msk.bf16.vlgmr.msrb.gmra.mxu3 %vm377_vm1, %v501_v62 }
 0x275   : > { %v386_v14 = vpop.xlane.xlu0 %385 }
 0x2b7   : > { %v500_v7 = vpop.xlane.xlu2 %499 }
 0x2bb   : > { %v446_v63 = vpop.xlane.xlu1 %445 }
 0x2bc   : > { %832 = vrcp.f32 %v446_v63 }
 0x2c2   : > { %v833_v1 = vpop.eup %832 }
 0x2c3   : > { %v554_v0 = vpop.xlane.xlu1 %553 }
 0x2c4   : > { %834 = vrcp.f32 %v554_v0 }
 0x2c5   : > { %836 = vrcp.f32 %v500_v7 }
 0x2c6   : > { %838 = vrcp.f32 %v386_v14 }
 0x2ca   : > { %v835_v4 = vpop.eup %834 }
 0x2cb   : > { %v837_v10 = vpop.eup %836 }
 0x2cc   : > { %v463_v2 = vpop.f32.mrf.mxu3  ;;  %v839_v16 = vpop.eup %838 }
 0x2cd   : > { %v468_v3 = vmul.f32 %v833_v1, %v463_v2  ;;  %v411_v17 = vmul.f32 %v839_v16, %v1027_v33 }
 0x2cf   : > { %578 = vrot.lane.b32.xlu1 %v468_v3, %s896_s12 }
 0x2d1   : > { %v571_v5 = vpop.f32.mrf.mxu2 }
 0x2d2   : > { %v576_v6 = vmul.f32 %v835_v4, %v571_v5 }
 0x2d4   : > { %v465_v8 = vpop.f32.mrf.mxu3  ;;  %586 = vrot.lane.b32.xlu2 %v576_v6, %s897_s5 }
 0x2d9   : > { %v573_v9 = vpop.f32.mrf.mxu2 }
 0x2dc   : > { %v517_v11 = vpop.f32.mrf.mxu3 }
 0x2dd   : > { %v522_v12 = vmul.f32 %v837_v10, %v517_v11 }
 0x2df   : > { %582 = vrot.lane.b32.xlu1 %v522_v12, %s898_s6 }
 0x2e4   : > { %v519_v13 = vpop.f32.mrf.mxu3 }
 0x32e   : > { %v587_v20 = vpop.permute.xlu2 %586 }
 0x341   : > { %v579_v15 = vpop.permute.xlu1 %578 }
 0x342   : > { %v589_v18 = vsel %vm357_vm0, %v411_v17, %v579_v15 }
 0x351   : > { %v583_v19 = vpop.permute.xlu1 %582 }
 0x352   : > { %v591_v21 = vsel %vm590_vm2, %v589_v18, %v583_v19 }
 0x353   : > { %v593_v22 = vsel %vm592_vm3, %v591_v21, %v587_v20 }
 0x354   : > { %v594_v23 = vpack.c.bf16 %v593_v22, %v593_v22 }
 0x356   : > { %595 = vst [vmem:[%s342_s22] sm:$0xf] %v594_v23 }
 0x357 PF: > { %s13_s18 = sadd.s32 1, %s894_s18   ;;  %s1076_s12 = smov %s874_s13 }
 0x358   : > { %p10_p12 = scmp.ge.s32.totalorder %s13_s18, 6   ;;  %s1077_s13 = smov %s972_s24 }
 0x359   : > { %s1078_s14 = smov %s886_s16  ;;  %s1079_s15 = smov %s890_s17 }
 0x35a   : > { %s1080_s16 = smov %s1083_s19  ;;  %s1081_s17 = smov %s1087_s20 }
 0x35b   :  { %12 = sbr.rel (!%p10_p12) target bundleno = 4 (0x4), region = 160 }

// kernel: siglip_forward.16
= control target key start
LH: loop header
LB: loop body
LE: loop exit
PB: predicated region body
PF: predicated region fallthrough
CT: control target
= control target key end

     0   :  { %s632_s15 = smov 0   ;;  %s707_s0 = inlined_call_operand.vmem [shape: bf16[32,256], index: 0, kind: input, shape index: {}]   ;;  %s708_s1 = inlined_call_operand.vmem [shape: bf16[256,128], index: 1, kind: input, shape index: {}]   ;;  %s709_s2 = inlined_call_operand.vmem [shape: f32[1,128], index: 2, kind: input, shape index: {}]   ;;  %s710_s3 = inlined_call_operand.vmem [shape: bf16[32,128], index: 3, kind: input, shape index: {}]   ;;  %s711_s4 = inlined_call_operand.vmem [shape: bf16[32,128], index: 4, kind: output, shape index: {}]  }
   0x1 LB: > { %s476_s16 = sadd.s32 4294967295, %s605_s15   ;;  %p480_p0 = scmp.ge.s32.totalorder %s605_s15, 1  ;;  %s605_s15 = sphi %s632_s15, %s14_s15  }
   0x2   : > { %p175_p1 = scmp.lt.s32.totalorder %s605_s15, 3 }
   0x4   : > { %p176_p2 = pnand %p480_p0, %p175_p1 }
   0x5   : > { %s481_s29 = sshll.u32 (!%p176_p2), %s476_s16, 1 }
   0x6   : > { %179 = sbr.rel (%p176_p2) target bundleno = 186 (0xba), region = 36  ;;  %p208_p3 = scmp.lt.s32.totalorder (!%p176_p2), %s481_s29, 3 }
   0xb   : > { %v572_v0 = vld [vmem:[%s708_s1 + $0x38] sm:$0xff]  ;;  %v571_v2 = vld [vmem:[%s708_s1 + $0x30] sm:$0xff]  ;;  %v570_v4 = vld [vmem:[%s708_s1 + $0x28] sm:$0xff]  ;;  %s713_s29 = smov (!%p208_p3, %s481_s29), 3 }
   0xc   : > { %v580_v1 = vld [vmem:[%s708_s1 + $0x78] sm:$0xff]  ;;  %370 = vmatpush.bf16.msra.mxu0 %v572_v0  ;;  %v579_v3 = vld [vmem:[%s708_s1 + $0x70] sm:$0xff]  ;;  %v578_v5 = vld [vmem:[%s708_s1 + $0x68] sm:$0xff]  ;;  %s562_s17 = sshll.u32 %s713_s29, 3  ;;  %s485_s30 = sshll.u32 %s713_s29, 2 }
   0xd   : > { %384 = vmatpush.bf16.msra.mxu1 %v580_v1  ;;  %v569_v6 = vld [vmem:[%s708_s1 + $0x20] sm:$0xff]  ;;  %v568_v8 = vld [vmem:[%s708_s1 + $0x18] sm:$0xff]  ;;  %v567_v10 = vld [vmem:[%s708_s1 + $0x10] sm:$0xff]  ;;  %s212_s24 = scalar_lea.vmem %s707_s0, %s562_s17  ;;  %s218_s9 = scalar_lea.vmem %s710_s3, %s485_s30 }
   0xe   : > { %v577_v7 = vld [vmem:[%s708_s1 + $0x60] sm:$0xff]  ;;  %v576_v9 = vld [vmem:[%s708_s1 + $0x58] sm:$0xff]  ;;  %v575_v11 = vld [vmem:[%s708_s1 + $0x50] sm:$0xff]  ;;  %s224_s11 = scalar_lea.vmem %s711_s4, %s485_s30 }
   0xf   : > { %v566_v12 = vld [vmem:[%s708_s1 + $0x8] sm:$0xff]  ;;  %v565_v14 = vld [vmem:[%s708_s1] sm:$0xff] }
  0x10   : > { %371 = vmatpush.bf16.msra.mxu0 %v571_v2  ;;  %v574_v13 = vld [vmem:[%s708_s1 + $0x48] sm:$0xff]  ;;  %v573_v15 = vld [vmem:[%s708_s1 + $0x40] sm:$0xff] }
  0x11   : > { %385 = vmatpush.bf16.msra.mxu1 %v579_v3  ;;  %v490_v16 = vld [vmem:[%s212_s24] sm:$0xf]  ;;  %v564_v17 = vld [vmem:[%s212_s24 + $0x4] sm:$0xf0]  ;;  %v563_v18 = vld [vmem:[%s212_s24 + $0x4] sm:$0xf] }
  0x12   : > { %v492_v19 = vld [vmem:[%s212_s24 + $0x8] sm:$0xf0]  ;;  %v491_v20 = vor.u32 %v564_v17, %v490_v16  ;;  %v598_v24 = vld [vmem:[%s709_s2] ss:$0 sm:$0xff] }
  0x13   : > { %v495_v21 = vor.u32 %v563_v18, %v492_v19  ;;  %v582_v26 = vld [vmem:[%s218_s9] sm:$0xff]  }
  0x14   : > { %372 = vmatpush.bf16.msra.mxu0 %v570_v4  ;;  %v583_v29 = vunpack.c.l.bf16 %v582_v26  ;;  %v584_v31 = vunpack.c.h.bf16 %v582_v26 }
  0x15   : > { %386 = vmatpush.bf16.msra.mxu1 %v578_v5 }
  0x18   : > { %373 = vmatpush.bf16.msra.mxu0 %v569_v6 }
  0x19   : > { %387 = vmatpush.bf16.msra.mxu1 %v577_v7 }
  0x1c   : > { %374 = vmatpush.bf16.msra.mxu0 %v568_v8 }
  0x1d   : > { %388 = vmatpush.bf16.msra.mxu1 %v576_v9 }
  0x20   : > { %375 = vmatpush.bf16.msra.mxu0 %v567_v10 }
  0x21   : > { %389 = vmatpush.bf16.msra.mxu1 %v575_v11 }
  0x24   : > { %376 = vmatpush.bf16.msra.mxu0 %v566_v12 }
  0x25   : > { %390 = vmatpush.bf16.msra.mxu1 %v574_v13 }
  0x28   : > { %377 = vmatpush.bf16.msra.mxu0 %v565_v14 }
  0x29   : > { %391 = vmatpush.bf16.msra.mxu1 %v573_v15 }
  0x2b   : > { %378 = vmatmul.bf16.vlgmr.msra.gmra.mxu0 %v491_v20 }
  0x2c   : > { %392 = vmatmul.bf16.vlgmr.msra.gmra.mxu1 %v495_v21 }
  0xa8   : > { %v379_v22 = vpop.f32.mrf.mxu0 }
  0xa9   : > { %v393_v23 = vpop.f32.mrf.mxu1  ;;  %v380_v25 = vadd.f32 %v598_v24, %v379_v22 }
  0xab   : > { %v394_v28 = vadd.f32 %v393_v23, %v380_v25 }
  0xad   : > { %v402_v34 = vadd.f32 %v583_v29, %v394_v28 }
  0xb0   : > { %v381_v27 = vpop.f32.mrf.mxu0 }
  0xb1   : > { %v382_v30 = vadd.f32 %v598_v24, %v381_v27  ;;  %v395_v32 = vpop.f32.mrf.mxu1 }
  0xb3   : > { %v396_v33 = vadd.f32 %v395_v32, %v382_v30 }
  0xb5   : > { %v403_v35 = vadd.f32 %v584_v31, %v396_v33 }
  0xb7   : > { %v588_v36 = vpack.c.bf16 %v403_v35, %v402_v34 }
  0xb9   : > { %589 = vst [vmem:[%s224_s11] sm:$0xff] %v588_v36  }
  0xba PF: > { %s14_s15 = sadd.s32 1, %s605_s15  }
  0xbb   : > { %p11_p4 = scmp.ge.s32.totalorder %s14_s15, 4  }
  0xbd   :  { %13 = sbr.rel (!%p11_p4) target bundleno = 1 (0x1), region = 69 }

// kernel: siglip_forward.21
= control target key start
LH: loop header
LB: loop body
LE: loop exit
PB: predicated region body
PF: predicated region fallthrough
CT: control target
= control target key end

     0   :  { %11 = vsyncpa [#allocation3], 0  ;;  %s1022_s0 = inlined_call_operand.vmem [shape: bf16[32,256], index: 0, kind: input, shape index: {}]   ;;  %s1023_s1 = inlined_call_operand.vmem [shape: bf16[256,128], index: 1, kind: input, shape index: {}]   ;;  %s1024_s2 = inlined_call_operand.vmem [shape: f32[1,128], index: 2, kind: input, shape index: {}]   ;;  %s1025_s3 = inlined_call_operand.vmem [shape: bf16[32,128], index: 3, kind: input, shape index: {}]   ;;  %s1026_s4 = inlined_call_operand.vmem [shape: f32[1,128], index: 4, kind: input, shape index: {}]   ;;  %s1027_s5 = inlined_call_operand.vmem [shape: f32[1,128], index: 5, kind: input, shape index: {}]   ;;  %s1028_s6 = inlined_call_operand.hbm [shape: bf16[32,128], index: 6, kind: output, shape index: {}]  }
   0x1   :  { %13 = vsyncpa [#allocation3 + $0x1], 0  ;;  %s878_s21 = smov 0   ;;  %s880_s22 = smov 0  }
   0x2   :  { %s882_s23 = smov 0   ;;  %s884_s24 = smov 0  }
   0x3 LB: > { %s899_s25 = sadd.s32 4294967295, %s838_s24   ;;  %s609_s26 = sadd.s32 4294967294, %s838_s24   ;;  %s838_s24 = sphi %s884_s24, %s1034_s24   ;;  %s834_s23 = sphi %s882_s23, %s1033_s23   ;;  %s830_s22 = sphi %s880_s22, %s1032_s22   ;;  %s826_s21 = sphi %s878_s21, %s1031_s21  }
   0x4   : > { %s903_s27 = sadd.s32 1, %s838_s24   ;;  %s162_s28 = sadd.s32 1, %s834_s23 }
   0x5   : > { %s159_s29 = ssub.s32 %s838_s24, %s903_s27  ;;  %p172_p0 = scmp.ne.s32.totalorder %s834_s23, %s830_s22 }
   0x6   : > { %p160_p1 = scmp.eq.s32.totalorder %s159_s29, 0  ;;  %p173_p2 = scmp.eq.s32.totalorder %s899_s25, 1 }
   0x7   : > { %p178_p3 = scmp.ne.s32.totalorder %s830_s22, %s826_s21  ;;  %p179_p4 = scmp.eq.s32.totalorder %s609_s26, 1 }
   0x8   : > { %s914_s30 = scalar_select %p160_p1, %s834_s23, %s162_s28  }
   0x9   : > { %p916_p5 = por %p173_p2, %p172_p0  ;;  %p920_p6 = por %p179_p4, %p178_p3 }
   0xa   : > { %p612_p7 = scmp.ge.s32.totalorder %s838_s24, 1  ;;  %p228_p8 = scmp.lt.s32.totalorder %s838_s24, 3 }
   0xc   : > { %p229_p9 = pnand %p612_p7, %p228_p8 }
   0xd   : > { %s614_s26 = sshll.u32 (!%p229_p9), %s899_s25, 1 }
   0xe   : > { %232 = sbr.rel (%p229_p9) target bundleno = 463 (0x1cf), region = 44  ;;  %p265_p10 = scmp.lt.s32.totalorder (!%p229_p9), %s614_s26, 3 }
  0x13   : > { %v706_v0 = vld [vmem:[%s1023_s1 + $0x38] sm:$0xff]  ;;  %v705_v2 = vld [vmem:[%s1023_s1 + $0x30] sm:$0xff]  ;;  %v704_v4 = vld [vmem:[%s1023_s1 + $0x28] sm:$0xff]  ;;  %s1036_s26 = smov (!%p265_p10, %s614_s26), 3  ;;  %v840_v36 = vmov 128.0  }
  0x14   : > { %v714_v1 = vld [vmem:[%s1023_s1 + $0x78] sm:$0xff]  ;;  %422 = vmatpush.bf16.msra.mxu0 %v706_v0  ;;  %v713_v3 = vld [vmem:[%s1023_s1 + $0x70] sm:$0xff]  ;;  %v712_v5 = vld [vmem:[%s1023_s1 + $0x68] sm:$0xff]  ;;  %s696_s19 = sshll.u32 %s1036_s26, 3  ;;  %s618_s17 = sshll.u32 %s1036_s26, 2  ;;  %770 = vrcp.f32 %v840_v36 }
  0x15   : > { %436 = vmatpush.bf16.msra.mxu1 %v714_v1  ;;  %v703_v6 = vld [vmem:[%s1023_s1 + $0x20] sm:$0xff]  ;;  %v702_v8 = vld [vmem:[%s1023_s1 + $0x18] sm:$0xff]  ;;  %v701_v10 = vld [vmem:[%s1023_s1 + $0x10] sm:$0xff]  ;;  %s269_s12 = scalar_lea.vmem %s1022_s0, %s696_s19  ;;  %s275_s20 = scalar_lea.vmem %s1025_s3, %s618_s17 }
  0x16   : > { %v711_v7 = vld [vmem:[%s1023_s1 + $0x60] sm:$0xff]  ;;  %v710_v9 = vld [vmem:[%s1023_s1 + $0x58] sm:$0xff]  ;;  %v709_v11 = vld [vmem:[%s1023_s1 + $0x50] sm:$0xff]  ;;  %s261_s26 = sand.u32 1, %s830_s22  }
  0x17   : > { %v700_v12 = vld [vmem:[%s1023_s1 + $0x8] sm:$0xff]  ;;  %v699_v14 = vld [vmem:[%s1023_s1] sm:$0xff]  ;;  %s613_s11 = sshll.u32 %s261_s26, 3 }
  0x18   : > { %423 = vmatpush.bf16.msra.mxu0 %v705_v2  ;;  %v708_v13 = vld [vmem:[%s1023_s1 + $0x48] sm:$0xff]  ;;  %v707_v15 = vld [vmem:[%s1023_s1 + $0x40] sm:$0xff]  ;;  %s263_s18 = scalar_lea.vmem [#allocation2], %s613_s11  ;;  %s796_s11 = scalar_lea.hbm %s1028_s6, 16 }
  0x19   : > { %437 = vmatpush.bf16.msra.mxu1 %v713_v3  ;;  %v621_v16 = vld [vmem:[%s269_s12] sm:$0xf]  ;;  %v698_v17 = vld [vmem:[%s269_s12 + $0x4] sm:$0xf0]  ;;  %v697_v18 = vld [vmem:[%s269_s12 + $0x4] sm:$0xf] }
  0x1a   : > { %v623_v19 = vld [vmem:[%s269_s12 + $0x8] sm:$0xf0]  ;;  %v622_v20 = vor.u32 %v698_v17, %v621_v16  ;;  %v767_v22 = vld [vmem:[%s1024_s2] ss:$0 sm:$0xff]  ;;  %v771_v37 = vpop.eup %770  ;;  %s715_s12 = sshll.u32 %s899_s25, 3  ;;  %s532_s19 = sshll.u32 %s263_s18, 4  ;;  %s533_s19 = int_to_ptr.vmem [resolvable:$true] %s532_s19 }
  0x1b   : > { %v626_v21 = vor.u32 %v697_v18, %v623_v19  ;;  %v717_v23 = vld [vmem:[%s275_s20] sm:$0xff]   ;;  %v461_v38 = vmul.f32 128.0, %v771_v37  ;;  %vm465_vm0 = vweird.f32 %v771_v37  ;;  %s531_s15 = scalar_lea.hbm %s1028_s6, %s715_s12  ;;  %s520_s25 = scalar_lea.sflag [#allocation3], %s261_s26 }
  0x1c   : > { %424 = vmatpush.bf16.msra.mxu0 %v704_v4  ;;  %v718_v27 = vunpack.c.l.bf16 %v717_v23  ;;  %v719_v32 = vunpack.c.h.bf16 %v717_v23  ;;  %s534_s20 = sshll.u32 %s531_s15, 4  ;;  %s535_s20 = int_to_ptr.hbm [resolvable:$true] %s534_s20 }
  0x1d   : > { %438 = vmatpush.bf16.msra.mxu1 %v712_v5  ;;  %v462_v39 = vsub.f32 1.0, %v461_v38  ;;  %v768_v5 = vld [vmem:[%s1026_s4] ss:$0 sm:$0xff]  ;;  %s790_s28 = sshra.s32 %s535_s20, 4  ;;  %s791_s28 = int_to_ptr.hbm [resolvable:$true] %s790_s28 }
  0x1e   : > { %s792_s29 = scalar_lea.hbm %s791_s28, 8  ;;  %p797_p0 = scmp.lt.s32.totalorder %s791_s28, %s1028_s6 }
  0x1f   : > { %v463_v40 = vmul.f32 %v771_v37, %v462_v39  ;;  %p793_p11 = scmp.ne.s32.totalorder %s791_s28, %s792_s29  ;;  %p798_p1 = scmp.lt.s32.totalorder %s796_s11, %s792_s29 }
  0x20   : > { %425 = vmatpush.bf16.msra.mxu0 %v703_v6 }
  0x21   : > { %439 = vmatpush.bf16.msra.mxu1 %v711_v7  ;;  %v464_v41 = vadd.f32 %v771_v37, %v463_v40  ;;  %p794_p12 = pnand %p793_p11, %p916_p5  ;;  %p799_p2 = por %p798_p1, %p797_p0 }
  0x23   : > { %v466_v42 = vsel %vm465_vm0, %v771_v37, %v464_v41  ;;  %p795_p13 = pneg %p794_p12 }
  0x24   : > { %426 = vmatpush.bf16.msra.mxu0 %v702_v8 }
  0x25   : > { %440 = vmatpush.bf16.msra.mxu1 %v710_v9  ;;  %p800_p3 = pnand %p799_p2, %p795_p13 }
  0x28   : > { %427 = vmatpush.bf16.msra.mxu0 %v701_v10 }
  0x29   : > { %441 = vmatpush.bf16.msra.mxu1 %v709_v11  ;;  %v769_v11 = vld [vmem:[%s1027_s5] ss:$0 sm:$0xff] }
  0x2c   : > { %428 = vmatpush.bf16.msra.mxu0 %v700_v12 }
  0x2d   : > { %442 = vmatpush.bf16.msra.mxu1 %v708_v13 }
  0x30   : > { %429 = vmatpush.bf16.msra.mxu0 %v699_v14 }
  0x31   : > { %443 = vmatpush.bf16.msra.mxu1 %v707_v15 }
  0x33   : > { %430 = vmatmul.bf16.vlgmr.msra.gmra.mxu0 %v622_v20 }
  0x34   : > { %444 = vmatmul.bf16.vlgmr.msra.gmra.mxu1 %v626_v21 }
  0xb0   : > { %v431_v24 = vpop.f32.mrf.mxu0 }
  0xb1   : > { %v445_v25 = vpop.f32.mrf.mxu1  ;;  %v432_v26 = vadd.f32 %v767_v22, %v431_v24 }
  0xb3   : > { %v446_v28 = vadd.f32 %v445_v25, %v432_v26 }
  0xb5   : > { %v454_v29 = vadd.f32 %v718_v27, %v446_v28 }
  0xb7   : > { %456 = vadd.xlane.f32.xlu0 %v454_v29 }
  0xb8   : > { %v433_v30 = vpop.f32.mrf.mxu0 }
  0xb9   : > { %v434_v31 = vadd.f32 %v767_v22, %v433_v30  ;;  %v447_v33 = vpop.f32.mrf.mxu1 }
  0xbb   : > { %v448_v34 = vadd.f32 %v447_v33, %v434_v31 }
  0xbd   : > { %v455_v35 = vadd.f32 %v719_v32, %v448_v34 }
  0xbf   : > { %458 = vadd.xlane.f32.xlu0 %v455_v35 }
 0x12a   : > { %v457_v43 = vpop.xlane.xlu0 %456 }
 0x12b   : > { %v467_v44 = vmul.f32 %v466_v42, %v457_v43 }
 0x12d   : > { %v469_v45 = vsub.f32 %v454_v29, %v467_v44 }
 0x12f   : > { %v471_v46 = vmul.f32 %v469_v45, %v469_v45 }
 0x131   : > { %473 = vadd.xlane.f32.xlu1 %v471_v46 }
 0x132   : > { %v459_v47 = vpop.xlane.xlu0 %458 }
 0x133   : > { %v468_v48 = vmul.f32 %v466_v42, %v459_v47 }
 0x135   : > { %v470_v49 = vsub.f32 %v455_v35, %v468_v48 }
 0x137   : > { %v472_v50 = vmul.f32 %v470_v49, %v470_v49 }
 0x139   : > { %475 = vadd.xlane.f32.xlu1 %v472_v50 }
 0x1a4   : > { %v474_v51 = vpop.xlane.xlu1 %473 }
 0x1a5   : > { %v477_v52 = vmul.f32 %v474_v51, %v466_v42 }
 0x1a7   : > { %v479_v53 = vadd.f32 1e-06, %v477_v52 }
 0x1a9   : > { %772 = vrsqrt.f32 %v479_v53  ;;  %vm487_vm2 = vweird.f32 %v479_v53 }
 0x1ac   : > { %v476_v54 = vpop.xlane.xlu1 %475 }
 0x1ad   : > { %v478_v55 = vmul.f32 %v476_v54, %v466_v42 }
 0x1af   : > { %v773_v56 = vpop.eup %772  ;;  %v480_v57 = vadd.f32 1e-06, %v478_v55 }
 0x1b0   : > { %v482_v58 = vmul.f32 %v773_v56, %v479_v53  ;;  %vm488_vm1 = vweird.f32 %v773_v56 }
 0x1b1   : > { %774 = vrsqrt.f32 %v480_v57  ;;  %vm489_vm3 = vmor %vm487_vm2, %vm488_vm1  ;;  %vm497_vm5 = vweird.f32 %v480_v57 }
 0x1b2   : > { %v483_v59 = vmul.f32 %v773_v56, %v482_v58 }
 0x1b4   : > { %v484_v60 = vmul.f32 0.5, %v483_v59 }
 0x1b6   : > { %v485_v61 = vsub.f32 1.5, %v484_v60 }
 0x1b7   : > { %v775_v62 = vpop.eup %774 }
 0x1b8   : > { %v486_v63 = vmul.f32 %v773_v56, %v485_v61  ;;  %v492_v0 = vmul.f32 %v775_v62, %v480_v57  ;;  %vm498_vm4 = vweird.f32 %v775_v62 }
 0x1b9   : > { %vm499_vm6 = vmor %vm497_vm5, %vm498_vm4 }
 0x1ba   : > { %v493_v1 = vmul.f32 %v775_v62, %v492_v0  ;;  %v490_v2 = vsel %vm489_vm3, %v773_v56, %v486_v63 }
 0x1bb   : > { %v501_v6 = vmul.f32 %v490_v2, %v469_v45 }
 0x1bc   : > { %v494_v3 = vmul.f32 0.5, %v493_v1 }
 0x1bd   : > { %v507_v9 = vmul.f32 %v768_v5, %v501_v6 }
 0x1be   : > { %v495_v4 = vsub.f32 1.5, %v494_v3 }
 0x1bf   : > { %v513_v13 = vadd.f32 %v769_v11, %v507_v9 }
 0x1c0   : > { %v496_v7 = vmul.f32 %v775_v62, %v495_v4 }
 0x1c2   : > { %v500_v8 = vsel %vm499_vm6, %v775_v62, %v496_v7 }
 0x1c3   : > { %v502_v10 = vmul.f32 %v500_v8, %v470_v49 }
 0x1c5   : > { %v508_v12 = vmul.f32 %v768_v5, %v502_v10 }
 0x1c7   : > { %v514_v14 = vadd.f32 %v769_v11, %v508_v12 }
 0x1c9   : > { %v723_v15 = vpack.c.bf16 %v514_v14, %v513_v13 }
 0x1cb   : > { %724 = vst [vmem:[%s263_s18] sm:$0xff] %v723_v15  }
 0x1cc   : > { %803 = shalt.err (!%p800_p3)
}
 0x1cd   : > { %s841_s26 = smov 64   ;;  %s842_s14 = smov 4  }
 0x1ce   : > { %725 = dma.vmem_to_hbm [thread:$0]  (%p916_p5), %s533_s19, 128, %s535_s20, %s520_s25, %s841_s26, %s841_s26, %s842_s14  }
 0x1cf PF: > { %p731_p4 = scmp.ge.s32.totalorder %s838_s24, 2  ;;  %s549_s15 = sand.u32 1, %s826_s21  }
 0x1d0   : > { %s550_s16 = scalar_lea.sflag [#allocation3], %s549_s15 }
 0x1d1   : > { %p728_p7 = pnand %p731_p4, %p920_p6 }
 0x1d3   : > { %p729_p8 = pneg %p728_p7 }
 0x1d5   : > { %821 = dma.done.wait (%p729_p8), %s550_s16, 128  }
 0x1d6   : > { %823 = vsyncadd (%p729_p8), %s550_s16, 4294967168  ;;  %p16_p9 = scmp.ge.s32.totalorder %s903_s27, 4   ;;  %s1031_s21 = smov %s830_s22 }
 0x1d7   : > { %s1032_s22 = smov %s834_s23  ;;  %s1033_s23 = smov %s914_s30 }
 0x1d8   : > { %s1034_s24 = smov %s903_s27  ;;  %18 = sbr.rel (!%p16_p9) target bundleno = 3 (0x3), region = 82 }
 0x1dd   :  { %556 = vsyncpa [#allocation3], 1 }
 0x1de   :  { %558 = vsyncpa [#allocation3 + $0x1], 1 }

// kernel: siglip_forward.15
= control target key start
LH: loop header
LB: loop body
LE: loop exit
PB: predicated region body
PF: predicated region fallthrough
CT: control target
= control target key end

     0   :  { %s683_s18 = smov 0   ;;  %s825_s0 = inlined_call_operand.vmem [shape: bf16[32,128], index: 0, kind: input, shape index: {}]   ;;  %s826_s1 = inlined_call_operand.vmem [shape: f32[1,128], index: 1, kind: input, shape index: {}]   ;;  %s827_s2 = inlined_call_operand.vmem [shape: f32[1,128], index: 2, kind: input, shape index: {}]   ;;  %s828_s3 = inlined_call_operand.vmem [shape: bf16[128,256], index: 3, kind: input, shape index: {}]   ;;  %s829_s4 = inlined_call_operand.vmem [shape: f32[1,256], index: 4, kind: input, shape index: {}]   ;;  %s830_s5 = inlined_call_operand.vmem [shape: bf16[32,256], index: 5, kind: output, shape index: {}]  }
   0x1 LB: > { %s522_s19 = sadd.s32 4294967295, %s650_s18   ;;  %p526_p0 = scmp.ge.s32.totalorder %s650_s18, 1  ;;  %s650_s18 = sphi %s683_s18, %s15_s18  }
   0x2   : > { %p188_p1 = scmp.lt.s32.totalorder %s650_s18, 3 }
   0x4   : > { %p189_p2 = pnand %p526_p0, %p188_p1 }
   0x5   : > { %s527_s20 = sshll.u32 (!%p189_p2), %s522_s19, 1 }
   0x6   : > { %192 = sbr.rel (%p189_p2) target bundleno = 454 (0x1c6), region = 40  ;;  %p218_p3 = scmp.lt.s32.totalorder (!%p189_p2), %s527_s20, 3 }
   0xb   : > { %s832_s20 = smov (!%p218_p3, %s527_s20), 3  ;;  %v652_v3 = vmov 128.0   ;;  %v590_v18 = vld [vmem:[%s828_s3 + $0x70] sm:$0xf]  ;;  %v614_v19 = vld [vmem:[%s828_s3 + $0x74] sm:$0xf0] }
   0xc   : > { %s528_s21 = sshll.u32 %s832_s20, 2  ;;  %630 = vrcp.f32 %v652_v3  ;;  %v613_v20 = vld [vmem:[%s828_s3 + $0x74] sm:$0xf]  ;;  %v591_v21 = vor.u32 %v614_v19, %v590_v18  ;;  %v592_v22 = vld [vmem:[%s828_s3 + $0x78] sm:$0xf0]  ;;  %s598_s26 = sshll.u32 %s832_s20, 3 }
   0xd   : > { %s221_s24 = scalar_lea.vmem %s825_s0, %s528_s21  ;;  %v595_v23 = vor.u32 %v613_v20, %v592_v22  ;;  %v582_v24 = vld [vmem:[%s828_s3 + $0x60] sm:$0xf]  ;;  %v612_v25 = vld [vmem:[%s828_s3 + $0x64] sm:$0xf0]  ;;  %v611_v26 = vld [vmem:[%s828_s3 + $0x64] sm:$0xf]  ;;  %s228_s29 = scalar_lea.vmem %s830_s5, %s598_s26 }
   0xe   : > { %v616_v0 = vld [vmem:[%s221_s24] sm:$0xff]   ;;  %396 = vmatpush.bf16.msra.mxu0 %v591_v21  ;;  %v583_v27 = vor.u32 %v612_v25, %v582_v24  ;;  %v584_v28 = vld [vmem:[%s828_s3 + $0x68] sm:$0xf0]  ;;  %v574_v30 = vld [vmem:[%s828_s3 + $0x50] sm:$0xf] }
   0xf   : > { %v617_v1 = vunpack.c.l.bf16 %v616_v0  ;;  %v618_v2 = vunpack.c.h.bf16 %v616_v0  ;;  %410 = vmatpush.bf16.msra.mxu1 %v595_v23  ;;  %v587_v29 = vor.u32 %v611_v26, %v584_v28  ;;  %v610_v31 = vld [vmem:[%s828_s3 + $0x54] sm:$0xf0]  ;;  %v609_v32 = vld [vmem:[%s828_s3 + $0x54] sm:$0xf]  ;;  %v576_v34 = vld [vmem:[%s828_s3 + $0x58] sm:$0xf0] }
  0x10   : > { %v575_v33 = vor.u32 %v610_v31, %v574_v30  ;;  %v579_v35 = vor.u32 %v609_v32, %v576_v34  ;;  %v566_v36 = vld [vmem:[%s828_s3 + $0x40] sm:$0xf]  ;;  %v608_v37 = vld [vmem:[%s828_s3 + $0x44] sm:$0xf0]  ;;  %v607_v38 = vld [vmem:[%s828_s3 + $0x44] sm:$0xf] }
  0x11   : > { %234 = vadd.xlane.f32.xlu0 %v617_v1  ;;  %v567_v39 = vor.u32 %v608_v37, %v566_v36  ;;  %v568_v40 = vld [vmem:[%s828_s3 + $0x48] sm:$0xf0]  ;;  %v558_v42 = vld [vmem:[%s828_s3 + $0x30] sm:$0xf]  ;;  %v606_v43 = vld [vmem:[%s828_s3 + $0x34] sm:$0xf0] }
  0x12   : > { %v631_v4 = vpop.eup %630  ;;  %397 = vmatpush.bf16.msra.mxu0 %v583_v27  ;;  %v571_v41 = vor.u32 %v607_v38, %v568_v40  ;;  %v605_v44 = vld [vmem:[%s828_s3 + $0x34] sm:$0xf]  ;;  %v559_v45 = vor.u32 %v606_v43, %v558_v42  ;;  %v560_v46 = vld [vmem:[%s828_s3 + $0x38] sm:$0xf0]  ;;  %v550_v48 = vld [vmem:[%s828_s3 + $0x20] sm:$0xf] }
  0x13   : > { %v239_v5 = vmul.f32 128.0, %v631_v4  ;;  %vm243_vm0 = vweird.f32 %v631_v4  ;;  %411 = vmatpush.bf16.msra.mxu1 %v587_v29  ;;  %v563_v47 = vor.u32 %v605_v44, %v560_v46  ;;  %v604_v49 = vld [vmem:[%s828_s3 + $0x24] sm:$0xf0]  ;;  %v603_v50 = vld [vmem:[%s828_s3 + $0x24] sm:$0xf] }
  0x14   : > { %v551_v51 = vor.u32 %v604_v49, %v550_v48  ;;  %v552_v52 = vld [vmem:[%s828_s3 + $0x28] sm:$0xf0]  ;;  %v542_v54 = vld [vmem:[%s828_s3 + $0x10] sm:$0xf]  ;;  %v602_v55 = vld [vmem:[%s828_s3 + $0x14] sm:$0xf0] }
  0x15   : > { %v240_v6 = vsub.f32 1.0, %v239_v5  ;;  %v555_v53 = vor.u32 %v603_v50, %v552_v52  ;;  %v601_v56 = vld [vmem:[%s828_s3 + $0x14] sm:$0xf]  ;;  %v543_v57 = vor.u32 %v602_v55, %v542_v54  ;;  %v544_v58 = vld [vmem:[%s828_s3 + $0x18] sm:$0xf0] }
  0x16   : > { %398 = vmatpush.bf16.msra.mxu0 %v575_v33  ;;  %v534_v59 = vld [vmem:[%s828_s3] sm:$0xf]  ;;  %v600_v60 = vld [vmem:[%s828_s3 + $0x4] sm:$0xf0]  ;;  %v547_v61 = vor.u32 %v601_v56, %v544_v58  ;;  %v599_v62 = vld [vmem:[%s828_s3 + $0x4] sm:$0xf] }
  0x17   : > { %v241_v7 = vmul.f32 %v631_v4, %v240_v6  ;;  %412 = vmatpush.bf16.msra.mxu1 %v579_v35  ;;  %v536_v63 = vld [vmem:[%s828_s3 + $0x8] sm:$0xf0]  ;;  %v628_v23 = vld [vmem:[%s826_s1] ss:$0 sm:$0xff] }
  0x18   : > { %v539_v3 = vor.u32 %v599_v62, %v536_v63  ;;  %v629_v28 = vld [vmem:[%s827_s2] ss:$0 sm:$0xff] }
  0x19   : > { %236 = vadd.xlane.f32.xlu0 %v618_v2  ;;  %v242_v8 = vadd.f32 %v631_v4, %v241_v7 }
  0x1a   : > { %399 = vmatpush.bf16.msra.mxu0 %v567_v39 }
  0x1b   : > { %v697_v9 = vsel %vm243_vm0, %v631_v4, %v242_v8  ;;  %413 = vmatpush.bf16.msra.mxu1 %v571_v41 }
  0x1e   : > { %400 = vmatpush.bf16.msra.mxu0 %v559_v45 }
  0x1f   : > { %414 = vmatpush.bf16.msra.mxu1 %v563_v47 }
  0x22   : > { %401 = vmatpush.bf16.msra.mxu0 %v551_v51 }
  0x23   : > { %415 = vmatpush.bf16.msra.mxu1 %v555_v53 }
  0x26   : > { %402 = vmatpush.bf16.msra.mxu0 %v543_v57 }
  0x27   : > { %416 = vmatpush.bf16.msra.mxu1 %v547_v61 }
  0x2b   : > { %417 = vmatpush.bf16.msra.mxu1 %v539_v3 }
  0x84   : > { %v235_v10 = vpop.xlane.xlu0 %234 }
  0x85   : > { %v245_v11 = vmul.f32 %v697_v9, %v235_v10 }
  0x87   : > { %v700_v12 = vsub.f32 %v617_v1, %v245_v11  ;;  %v535_v1 = vor.u32 %v600_v60, %v534_v59 }
  0x89   : > { %v249_v13 = vmul.f32 %v700_v12, %v700_v12  ;;  %403 = vmatpush.bf16.msra.mxu0 %v535_v1 }
  0x8b   : > { %251 = vadd.xlane.f32.xlu1 %v249_v13 }
  0x8c   : > { %v237_v14 = vpop.xlane.xlu0 %236 }
  0x8d   : > { %v246_v15 = vmul.f32 %v697_v9, %v237_v14 }
  0x8f   : > { %v705_v16 = vsub.f32 %v618_v2, %v246_v15 }
  0x91   : > { %v250_v17 = vmul.f32 %v705_v16, %v705_v16 }
  0x93   : > { %253 = vadd.xlane.f32.xlu1 %v250_v17 }
  0xfe   : > { %v252_v0 = vpop.xlane.xlu1 %251 }
  0xff   : > { %v255_v2 = vmul.f32 %v252_v0, %v697_v9 }
 0x101   : > { %v257_v4 = vadd.f32 1e-06, %v255_v2 }
 0x103   : > { %632 = vrsqrt.f32 %v257_v4  ;;  %vm265_vm2 = vweird.f32 %v257_v4 }
 0x106   : > { %v254_v5 = vpop.xlane.xlu1 %253 }
 0x107   : > { %v256_v6 = vmul.f32 %v254_v5, %v697_v9 }
 0x109   : > { %v633_v7 = vpop.eup %632  ;;  %v258_v8 = vadd.f32 1e-06, %v256_v6 }
 0x10a   : > { %v260_v10 = vmul.f32 %v633_v7, %v257_v4  ;;  %vm266_vm1 = vweird.f32 %v633_v7 }
 0x10b   : > { %634 = vrsqrt.f32 %v258_v8  ;;  %vm267_vm3 = vmor %vm265_vm2, %vm266_vm1  ;;  %vm275_vm5 = vweird.f32 %v258_v8 }
 0x10c   : > { %v261_v11 = vmul.f32 %v633_v7, %v260_v10 }
 0x10e   : > { %v262_v13 = vmul.f32 0.5, %v261_v11 }
 0x110   : > { %v263_v14 = vsub.f32 1.5, %v262_v13 }
 0x111   : > { %v635_v15 = vpop.eup %634 }
 0x112   : > { %v264_v17 = vmul.f32 %v633_v7, %v263_v14  ;;  %v270_v18 = vmul.f32 %v635_v15, %v258_v8  ;;  %vm276_vm4 = vweird.f32 %v635_v15 }
 0x113   : > { %vm277_vm6 = vmor %vm275_vm5, %vm276_vm4 }
 0x114   : > { %v271_v19 = vmul.f32 %v635_v15, %v270_v18  ;;  %v268_v21 = vsel %vm267_vm3, %v633_v7, %v264_v17 }
 0x115   : > { %v279_v9 = vmul.f32 %v268_v21, %v700_v12  ;;  %v310_v12 = vld [vmem:[%s829_s4] sm:$0x3] }
 0x116   : > { %v272_v20 = vmul.f32 0.5, %v271_v19  ;;  %v312_v33 = vperm.slane %v310_v12, 0  ;;  %v313_v34 = vperm.slane %v310_v12, 1 }
 0x117   : > { %v285_v27 = vmul.f32 %v628_v23, %v279_v9 }
 0x118   : > { %v273_v22 = vsub.f32 1.5, %v272_v20 }
 0x119   : > { %v291_v30 = vadd.f32 %v629_v28, %v285_v27 }
 0x11a   : > { %v274_v24 = vmul.f32 %v635_v15, %v273_v22 }
 0x11c   : > { %v278_v25 = vsel %vm277_vm6, %v635_v15, %v274_v24 }
 0x11d   : > { %v280_v26 = vmul.f32 %v278_v25, %v705_v16 }
 0x11f   : > { %v286_v29 = vmul.f32 %v628_v23, %v280_v26 }
 0x121   : > { %v292_v31 = vadd.f32 %v629_v28, %v286_v29 }
 0x123   : > { %v293_v32 = vpack.c.bf16 %v292_v31, %v291_v30 }
 0x125   : > { %404 = vmatmul.bf16.vlgmr.msra.gmra.mxu0 %v293_v32  ;;  %418 = vmatmul.bf16.vlgmr.msra.gmra.mxu1 %v293_v32 }
 0x1a2   : > { %v405_v35 = vpop.f32.mrf.mxu0  ;;  %v419_v36 = vpop.f32.mrf.mxu1 }
 0x1a3   : > { %v406_v16 = vadd.f32 %v405_v35, %v312_v33  ;;  %v420_v37 = vadd.f32 %v419_v36, %v313_v34 }
 0x1a5   : > { %v428_v38 = vmul.f32 0.044715, %v406_v16  ;;  %v429_v39 = vmul.f32 0.044715, %v420_v37  ;;  %v424_v62 = vmul.f32 0.5, %v406_v16  ;;  %v425_v2 = vmul.f32 0.5, %v420_v37 }
 0x1a7   : > { %v432_v40 = vmul.f32 %v428_v38, %v406_v16  ;;  %v433_v41 = vmul.f32 %v429_v39, %v420_v37 }
 0x1a9   : > { %v436_v42 = vmul.f32 %v432_v40, %v406_v16  ;;  %v437_v43 = vmul.f32 %v433_v41, %v420_v37 }
 0x1aa   : > { %v407_v44 = vpop.f32.mrf.mxu0  ;;  %v421_v45 = vpop.f32.mrf.mxu1 }
 0x1ab   : > { %v440_v46 = vadd.f32 %v436_v42, %v406_v16  ;;  %v441_v47 = vadd.f32 %v437_v43, %v420_v37  ;;  %v408_v48 = vadd.f32 %v407_v44, %v312_v33  ;;  %v422_v49 = vadd.f32 %v421_v45, %v313_v34 }
 0x1ad   : > { %v444_v50 = vmul.f32 0.7978846, %v440_v46  ;;  %v445_v51 = vmul.f32 0.7978846, %v441_v47  ;;  %v430_v52 = vmul.f32 0.044715, %v408_v48 }
 0x1ae   : > { %v431_v53 = vmul.f32 0.044715, %v422_v49  ;;  %v426_v10 = vmul.f32 0.5, %v408_v48  ;;  %v427_v13 = vmul.f32 0.5, %v422_v49 }
 0x1af   : > { %636 = vtanh.f32 %v444_v50  ;;  %v434_v54 = vmul.f32 %v430_v52, %v408_v48 }
 0x1b0   : > { %638 = vtanh.f32 %v445_v51  ;;  %v435_v55 = vmul.f32 %v431_v53, %v422_v49 }
 0x1b1   : > { %v438_v56 = vmul.f32 %v434_v54, %v408_v48 }
 0x1b2   : > { %v439_v57 = vmul.f32 %v435_v55, %v422_v49 }
 0x1b3   : > { %v442_v58 = vadd.f32 %v438_v56, %v408_v48 }
 0x1b4   : > { %v443_v59 = vadd.f32 %v439_v57, %v422_v49 }
 0x1b5   : > { %v637_v60 = vpop.eup %636  ;;  %v446_v0 = vmul.f32 0.7978846, %v442_v58 }
 0x1b6   : > { %v639_v61 = vpop.eup %638  ;;  %v452_v63 = vadd.f32 1.0, %v637_v60  ;;  %v447_v1 = vmul.f32 0.7978846, %v443_v59 }
 0x1b7   : > { %v453_v3 = vadd.f32 1.0, %v639_v61  ;;  %640 = vtanh.f32 %v446_v0 }
 0x1b8   : > { %v456_v4 = vmul.f32 %v452_v63, %v424_v62  ;;  %642 = vtanh.f32 %v447_v1 }
 0x1b9   : > { %v457_v5 = vmul.f32 %v453_v3, %v425_v2 }
 0x1bb   : > { %v460_v6 = vpack.c.bf16 %v457_v5, %v456_v4 }
 0x1bd   : > { %462 = vst [vmem:[%s228_s29] sm:$0xff] %v460_v6  ;;  %v641_v7 = vpop.eup %640 }
 0x1be   : > { %v643_v8 = vpop.eup %642  ;;  %v454_v11 = vadd.f32 1.0, %v641_v7 }
 0x1bf   : > { %v455_v14 = vadd.f32 1.0, %v643_v8 }
 0x1c0   : > { %v458_v15 = vmul.f32 %v454_v11, %v426_v10 }
 0x1c1   : > { %v459_v17 = vmul.f32 %v455_v14, %v427_v13 }
 0x1c3   : > { %v461_v18 = vpack.c.bf16 %v459_v17, %v458_v15 }
 0x1c5   : > { %463 = vst [vmem:[%s228_s29 + $0x8] sm:$0xff] %v461_v18 }
 0x1c6 PF: > { %s15_s18 = sadd.s32 1, %s650_s18  }
 0x1c7   : > { %p12_p4 = scmp.ge.s32.totalorder %s15_s18, 4  }
 0x1c9   :  { %14 = sbr.rel (!%p12_p4) target bundleno = 1 (0x1), region = 70 }

</bundles_post_ra>
